<compile_context>
chip_gen: v5e
topology: v5e:2x2
jax: 0.10.0
libtpu: 0.0.40
codegen_flags: <defaults>
</compile_context>

<pallas_src>
import jax
import jax.numpy as jnp
from jax.experimental import pallas as pl
from jax.experimental.pallas import tpu as pltpu

LANE = 128


def timm_base_forward(x_nchw, conv_w, conv_b, head_w, head_b):
    """TimmBase.forward: h = backbone(x); y = forward_head(h).

    x_nchw : (B, Cin, H, W)      PyTorch NCHW input
    conv_w : (Cout, Cin, Kh, Kw) torch conv weight (odd Kh/Kw, SAME padding)
    conv_b : (Cout,)
    head_w : (Cout, N)
    head_b : (N,)
    """
    B, Cin, H, W = x_nchw.shape
    Cout, _, KH, KW = conv_w.shape
    N = head_w.shape[1]
    assert KH % 2 == 1 and KW % 2 == 1, "SAME padding assumes odd kernel"
    ph, pw = KH // 2, KW // 2
    Hp, Wp = H + 2 * ph, W + 2 * pw
    HW = H * W
    inv_hw = 1.0 / float(HW)
    Npad = ((N + LANE - 1) // LANE) * LANE    # lane-dense output block
    Kslab = KH * KW * Cin                     # fused contraction width

    # ---- wrapper-side layout plumbing (single pass over the input) ----------
    x_nhwc = jnp.transpose(x_nchw, (0, 2, 3, 1))                   # (B,H,W,Cin)
    xp = jnp.pad(x_nhwc, ((0, 0), (ph, ph), (pw, pw), (0, 0)))     # SAME pad
    xp = xp.astype(jnp.bfloat16)                                   # MXU inputs

    # (Cout, Cin, Kh, Kw) -> (Kh, Kw, Cin, Cout) -> (Kh*Kw*Cin, Cout): one slab
    w_slab = jnp.transpose(conv_w, (2, 3, 1, 0)).reshape(Kslab, Cout)
    w_slab = w_slab.astype(jnp.bfloat16)
    cb = conv_b.reshape(1, Cout).astype(jnp.float32)
    hw_p = jnp.zeros((Cout, Npad), jnp.float32).at[:, :N].set(
        head_w.astype(jnp.float32))
    hb_p = jnp.zeros((1, Npad), jnp.float32).at[0, :N].set(
        head_b.astype(jnp.float32))

    def kernel(x_ref, w_ref, cb_ref, hw_ref, hb_ref, o_ref):
        # x_ref  : (1, Hp, Wp, Cin) bf16   padded NHWC image for this batch elem
        # w_ref  : (Kslab, Cout)    bf16   fused per-slab conv weights
        # cb_ref : (1, Cout)        f32    conv bias
        # hw_ref : (Cout, Npad)     f32    head weight (lane-padded)
        # hb_ref : (1, Npad)        f32    head bias   (lane-padded)
        # o_ref  : (1, 1, Npad)     f32    fused head output for this image
        x = x_ref[0]                                   # (Hp, Wp, Cin) bf16

        # Build the patch slab ONCE (lane-concat of the Kh*Kw shifted taps,
        # then a single sublane-merging reshape), then ONE MXU matmul.
        taps = [x[kh:kh + H, kw:kw + W, :]
                for kh in range(KH) for kw in range(KW)]   # (H, W, Cin) each
        slab = jnp.concatenate(taps, axis=-1).reshape(HW, Kslab)
        acc = jnp.dot(slab, w_ref[...],
                      preferred_element_type=jnp.float32)  # (HW, Cout) f32

        acts = jnp.maximum(acc + cb_ref[...], 0.0)     # bias + ReLU (f32, VPU)
        feat = jnp.sum(acts, axis=0, keepdims=True) * inv_hw   # GAP -> (1,Cout)

        # Fused linear head, lane-dense (1, 1, Npad) store.
        y = jnp.dot(feat, hw_ref[...],
                    preferred_element_type=jnp.float32) + hb_ref[...]
        o_ref[...] = y.reshape(o_ref.shape)

    flops = 2 * B * HW * Kslab * Cout + 2 * B * Cout * Npad
    bytes_accessed = (xp.size * 2 + w_slab.size * 2 + cb.size * 4
                      + hw_p.size * 4 + hb_p.size * 4 + B * Npad * 4)

    out = pl.pallas_call(
        kernel,
        out_shape=jax.ShapeDtypeStruct((B, 1, Npad), jnp.float32),
        grid=(B,),                                     # one step per image
        in_specs=[
            pl.BlockSpec((1, Hp, Wp, Cin), lambda b: (b, 0, 0, 0)),
            pl.BlockSpec((Kslab, Cout), lambda b: (0, 0)),
            pl.BlockSpec((1, Cout), lambda b: (0, 0)),
            pl.BlockSpec((Cout, Npad), lambda b: (0, 0)),
            pl.BlockSpec((1, Npad), lambda b: (0, 0)),
        ],
        out_specs=pl.BlockSpec((1, 1, Npad), lambda b: (b, 0, 0)),
        compiler_params=pltpu.CompilerParams(
            dimension_semantics=("parallel",)),        # megacore over batch
        cost_estimate=pl.CostEstimate(flops=flops, transcendentals=0,
                                      bytes_accessed=bytes_accessed),
    )(xp, w_slab, cb, hw_p, hb_p)

    return out.reshape(B, Npad)[:, :N]


# ----------------------------------------------------------------------------
# Pure-JAX reference (same bf16-quantized matmul inputs, f32 accumulation)
# ----------------------------------------------------------------------------
def _reference(x, conv_w, conv_b, head_w, head_b):
    xq = x.astype(jnp.bfloat16).astype(jnp.float32)
    wq = conv_w.astype(jnp.bfloat16).astype(jnp.float32)
    h = jax.lax.conv_general_dilated(
        xq, wq, window_strides=(1, 1), padding="SAME",
        dimension_numbers=("NCHW", "OIHW", "NCHW"),
        precision=jax.lax.Precision.HIGHEST)
    h = jax.nn.relu(h + conv_b[None, :, None, None])
    feat = jnp.mean(h, axis=(2, 3))
    return jnp.dot(feat, head_w, precision=jax.lax.Precision.HIGHEST) + head_b


if __name__ == "__main__":
    key = jax.random.PRNGKey(0)
    k1, k2, k3, k4, k5 = jax.random.split(key, 5)

    B, Cin, H, W = 2, 3, 16, 16      # PyTorch NCHW input convention
    Cout, K = 32, 3                  # backbone conv stem
    num_classes = 8                  # head output dim

    x = jax.random.normal(k1, (B, Cin, H, W), jnp.float32)
    conv_w = 0.1 * jax.random.normal(k2, (Cout, Cin, K, K), jnp.float32)
    conv_b = 0.1 * jax.random.normal(k3, (Cout,), jnp.float32)
    head_w = 0.1 * jax.random.normal(k4, (Cout, num_classes), jnp.float32)
    head_b = 0.1 * jax.random.normal(k5, (num_classes,), jnp.float32)

    y = timm_base_forward(x, conv_w, conv_b, head_w, head_b)
    jax.block_until_ready(y)

    y_ref = _reference(x, conv_w, conv_b, head_w, head_b)
    assert y.shape == (B, num_classes)
    assert jnp.allclose(y, y_ref, atol=2e-3, rtol=2e-3), "mismatch vs reference"

    print("KERNEL_OK")
</pallas_src>

<mosaic_0001>
module attributes {stable_mosaic.version = 11 : i64} {
  func.func @kernel(%arg0: i32, %arg1: memref<1x18x18x3xbf16, #tpu.memory_space<vmem>>, %arg2: memref<27x32xbf16, #tpu.memory_space<vmem>>, %arg3: memref<1x32xf32, #tpu.memory_space<vmem>>, %arg4: memref<32x128xf32, #tpu.memory_space<vmem>>, %arg5: memref<1x128xf32, #tpu.memory_space<vmem>>, %arg6: memref<1x1x128xf32, #tpu.memory_space<vmem>>) attributes {dimension_semantics = [#tpu.dimension_semantics<parallel>], iteration_bounds = array<i64: 2>, scalar_prefetch = 0 : i64, scratch_operands = 0 : i64, tpu.core_type = #tpu.core_type<tc>, window_params = [{transform_indices = @transform_0, window_bounds = array<i64: 1, 18, 18, 3>}, {pipeline_mode = #tpu.pipeline_mode<synchronous>, transform_indices = @transform_1, window_bounds = array<i64: 27, 32>}, {pipeline_mode = #tpu.pipeline_mode<synchronous>, transform_indices = @transform_2, window_bounds = array<i64: 1, 32>}, {pipeline_mode = #tpu.pipeline_mode<synchronous>, transform_indices = @transform_3, window_bounds = array<i64: 32, 128>}, {pipeline_mode = #tpu.pipeline_mode<synchronous>, transform_indices = @transform_4, window_bounds = array<i64: 1, 128>}, {transform_indices = @transform_5, window_bounds = array<i64: 1, 1, 128>}]} {
    %c0 = arith.constant 0 : index
    %c0_0 = arith.constant 0 : index
    %c0_1 = arith.constant 0 : index
    %c0_2 = arith.constant 0 : index
    %0 = vector.load %arg1[%c0, %c0_0, %c0_1, %c0_2] : memref<1x18x18x3xbf16, #tpu.memory_space<vmem>>, vector<1x18x18x3xbf16>
    %1 = vector.shape_cast %0 : vector<1x18x18x3xbf16> to vector<18x18x3xbf16>
    %2 = vector.extract_strided_slice %1 {offsets = [0, 0, 0], sizes = [16, 16, 3], strides = [1, 1, 1]} : vector<18x18x3xbf16> to vector<16x16x3xbf16>
    %3 = vector.extract_strided_slice %1 {offsets = [0, 1, 0], sizes = [16, 16, 3], strides = [1, 1, 1]} : vector<18x18x3xbf16> to vector<16x16x3xbf16>
    %4 = vector.extract_strided_slice %1 {offsets = [0, 2, 0], sizes = [16, 16, 3], strides = [1, 1, 1]} : vector<18x18x3xbf16> to vector<16x16x3xbf16>
    %5 = vector.extract_strided_slice %1 {offsets = [1, 0, 0], sizes = [16, 16, 3], strides = [1, 1, 1]} : vector<18x18x3xbf16> to vector<16x16x3xbf16>
    %6 = vector.extract_strided_slice %1 {offsets = [1, 1, 0], sizes = [16, 16, 3], strides = [1, 1, 1]} : vector<18x18x3xbf16> to vector<16x16x3xbf16>
    %7 = vector.extract_strided_slice %1 {offsets = [1, 2, 0], sizes = [16, 16, 3], strides = [1, 1, 1]} : vector<18x18x3xbf16> to vector<16x16x3xbf16>
    %8 = vector.extract_strided_slice %1 {offsets = [2, 0, 0], sizes = [16, 16, 3], strides = [1, 1, 1]} : vector<18x18x3xbf16> to vector<16x16x3xbf16>
    %9 = vector.extract_strided_slice %1 {offsets = [2, 1, 0], sizes = [16, 16, 3], strides = [1, 1, 1]} : vector<18x18x3xbf16> to vector<16x16x3xbf16>
    %10 = vector.extract_strided_slice %1 {offsets = [2, 2, 0], sizes = [16, 16, 3], strides = [1, 1, 1]} : vector<18x18x3xbf16> to vector<16x16x3xbf16>
    %11 = tpu.concatenate %2, %3, %4, %5, %6, %7, %8, %9, %10 in 2 : vector<16x16x3xbf16>, vector<16x16x3xbf16>, vector<16x16x3xbf16>, vector<16x16x3xbf16>, vector<16x16x3xbf16>, vector<16x16x3xbf16>, vector<16x16x3xbf16>, vector<16x16x3xbf16>, vector<16x16x3xbf16> -> vector<16x16x27xbf16>
    %12 = vector.shape_cast %11 : vector<16x16x27xbf16> to vector<256x27xbf16>
    %c0_3 = arith.constant 0 : index
    %c0_4 = arith.constant 0 : index
    %13 = vector.load %arg2[%c0_3, %c0_4] : memref<27x32xbf16, #tpu.memory_space<vmem>>, vector<27x32xbf16>
    %cst = arith.constant dense<0.000000e+00> : vector<256x32xf32>
    %14 = tpu.matmul %12, %13, %cst {dimension_numbers = #tpu.dot_dimension_numbers<[1], [0], [0], [1], [0, 0, 1, 1], [], []>} : vector<256x27xbf16>, vector<27x32xbf16>, vector<256x32xf32> -> vector<256x32xf32>
    %c0_5 = arith.constant 0 : index
    %c0_6 = arith.constant 0 : index
    %15 = vector.load %arg3[%c0_5, %c0_6] : memref<1x32xf32, #tpu.memory_space<vmem>>, vector<1x32xf32>
    %16 = vector.broadcast %15 : vector<1x32xf32> to vector<256x32xf32>
    %17 = arith.addf %14, %16 : vector<256x32xf32>
    %cst_7 = arith.constant 0.000000e+00 : f32
    %18 = vector.broadcast %cst_7 : f32 to vector<256x32xf32>
    %19 = arith.maximumf %17, %18 : vector<256x32xf32>
    %cst_8 = arith.constant dense<0.000000e+00> : vector<32xf32>
    %20 = vector.multi_reduction <add>, %19, %cst_8 [0] : vector<256x32xf32> to vector<32xf32>
    %21 = vector.shape_cast %20 : vector<32xf32> to vector<1x32xf32>
    %cst_9 = arith.constant 3.906250e-03 : f32
    %22 = vector.broadcast %cst_9 : f32 to vector<1x32xf32>
    %23 = arith.mulf %21, %22 : vector<1x32xf32>
    %c0_10 = arith.constant 0 : index
    %c0_11 = arith.constant 0 : index
    %24 = vector.load %arg4[%c0_10, %c0_11] : memref<32x128xf32, #tpu.memory_space<vmem>>, vector<32x128xf32>
    %cst_12 = arith.constant dense<0.000000e+00> : vector<1x128xf32>
    %25 = tpu.matmul %23, %24, %cst_12 {dimension_numbers = #tpu.dot_dimension_numbers<[1], [0], [0], [1], [0, 0, 1, 1], [], []>} : vector<1x32xf32>, vector<32x128xf32>, vector<1x128xf32> -> vector<1x128xf32>
    %c0_13 = arith.constant 0 : index
    %c0_14 = arith.constant 0 : index
    %26 = vector.load %arg5[%c0_13, %c0_14] : memref<1x128xf32, #tpu.memory_space<vmem>>, vector<1x128xf32>
    %27 = arith.addf %25, %26 : vector<1x128xf32>
    %28 = vector.shape_cast %27 : vector<1x128xf32> to vector<1x1x128xf32>
    %c0_15 = arith.constant 0 : index
    %c0_16 = arith.constant 0 : index
    %c0_17 = arith.constant 0 : index
    %29 = vector.load %arg6[%c0_15, %c0_16, %c0_17] : memref<1x1x128xf32, #tpu.memory_space<vmem>>, vector<1x1x128xf32>
    tpu.vector_store %arg6[%c0_15, %c0_16, %c0_17], %28 {strides = array<i32>} : memref<1x1x128xf32, #tpu.memory_space<vmem>>, vector<1x1x128xf32>,
    return
  }
  func.func @transform_0(%arg0: i32) -> (i32, i32, i32, i32) {
    %c0_i32 = arith.constant 0 : i32
    %c0_i32_0 = arith.constant 0 : i32
    %c0_i32_1 = arith.constant 0 : i32
    %c0_i32_2 = arith.constant 0 : i32
    return %arg0, %c0_i32, %c0_i32_0, %c0_i32_1 : i32, i32, i32, i32
  }
  func.func @transform_1(%arg0: i32) -> (i32, i32) {
    %c0_i32 = arith.constant 0 : i32
    %c0_i32_0 = arith.constant 0 : i32
    %c0_i32_1 = arith.constant 0 : i32
    return %c0_i32, %c0_i32_0 : i32, i32
  }
  func.func @transform_2(%arg0: i32) -> (i32, i32) {
    %c0_i32 = arith.constant 0 : i32
    %c0_i32_0 = arith.constant 0 : i32
    %c0_i32_1 = arith.constant 0 : i32
    return %c0_i32, %c0_i32_0 : i32, i32
  }
  func.func @transform_3(%arg0: i32) -> (i32, i32) {
    %c0_i32 = arith.constant 0 : i32
    %c0_i32_0 = arith.constant 0 : i32
    %c0_i32_1 = arith.constant 0 : i32
    return %c0_i32, %c0_i32_0 : i32, i32
  }
  func.func @transform_4(%arg0: i32) -> (i32, i32) {
    %c0_i32 = arith.constant 0 : i32
    %c0_i32_0 = arith.constant 0 : i32
    %c0_i32_1 = arith.constant 0 : i32
    return %c0_i32, %c0_i32_0 : i32, i32
  }
  func.func @transform_5(%arg0: i32) -> (i32, i32, i32) {
    %c0_i32 = arith.constant 0 : i32
    %c0_i32_0 = arith.constant 0 : i32
    %c0_i32_1 = arith.constant 0 : i32
    return %arg0, %c0_i32, %c0_i32_0 : i32, i32, i32
  }
}

</mosaic_0001>

<bundles_post_ra>
// kernel: tpu_custom_call.1
= control target key start
LH: loop header
LB: loop body
LE: loop exit
PB: predicated region body
PF: predicated region fallthrough
CT: control target
= control target key end

     0   :  { %10 = vsyncpa [#allocation3], 0  ;;  %s2700_s0 = inlined_call_operand.vmem [shape: bf16[2,18,18,3], index: 0, kind: input, shape index: {}]   ;;  %s2701_s1 = inlined_call_operand.vmem [shape: bf16[27,32], index: 1, kind: input, shape index: {}]   ;;  %s2702_s2 = inlined_call_operand.vmem [shape: f32[1,32], index: 2, kind: input, shape index: {}]   ;;  %s2703_s3 = inlined_call_operand.vmem [shape: f32[32,128], index: 3, kind: input, shape index: {}]   ;;  %s2704_s4 = inlined_call_operand.vmem [shape: f32[1,128], index: 4, kind: input, shape index: {}]   ;;  %s2705_s5 = inlined_call_operand.hbm [shape: f32[2,1,128], index: 5, kind: output, shape index: {}]  }
   0x1   :  { %12 = vsyncpa [#allocation3 + $0x1], 0  ;;  %s1844_s18 = smov 0   ;;  %s1846_s19 = smov 0  }
   0x2   :  { %s1848_s20 = smov 0   ;;  %s1850_s21 = smov 0  }
   0x3 LB: > { %s1865_s22 = sadd.s32 4294967295, %s1803_s21   ;;  %s1561_s23 = sadd.s32 4294967294, %s1803_s21   ;;  %s1803_s21 = sphi %s1850_s21, %s2711_s21   ;;  %s1799_s20 = sphi %s1848_s20, %s2710_s20   ;;  %s1795_s19 = sphi %s1846_s19, %s2709_s19   ;;  %s1791_s18 = sphi %s1844_s18, %s2708_s18  }
   0x4   : > { %s1869_s24 = sadd.s32 1, %s1803_s21   ;;  %s135_s25 = sadd.s32 1, %s1799_s20 }
   0x5   : > { %s132_s26 = ssub.s32 %s1803_s21, %s1869_s24  ;;  %p145_p0 = scmp.ne.s32.totalorder %s1799_s20, %s1795_s19 }
   0x6   : > { %p133_p1 = scmp.eq.s32.totalorder %s132_s26, 0  ;;  %p146_p2 = scmp.eq.s32.totalorder %s1865_s22, 1 }
   0x7   : > { %p151_p3 = scmp.ne.s32.totalorder %s1795_s19, %s1791_s18  ;;  %p152_p4 = scmp.eq.s32.totalorder %s1561_s23, 1 }
   0x8   : > { %s1880_s27 = scalar_select %p133_p1, %s1799_s20, %s135_s25  }
   0x9   : > { %p1882_p5 = por %p146_p2, %p145_p0  ;;  %p1886_p6 = por %p152_p4, %p151_p3 }
   0xa   : > { %p1564_p7 = scmp.ge.s32.totalorder %s1803_s21, 1  ;;  %p190_p8 = scmp.lt.s32.totalorder %s1803_s21, 3 }
   0xc   : > { %p191_p9 = pnand %p1564_p7, %p190_p8 }
   0xd   : > { %p217_p10 = scmp.lt.s32.totalorder (!%p191_p9), %s1865_s22, 1  ;;  %s1805_s10 = smov (!%p191_p9), 9  }
   0xe   : > { %194 = sbr.rel (%p191_p9) target bundleno = 778 (0x30a), region = 40  ;;  %s1806_s11 = smov (!%p191_p9), 18  }
   0xf   : > { %s1807_s12 = smov (!%p191_p9), 6   ;;  %s1808_s13 = smov (!%p191_p9), 15  }
  0x10   : > { %s1809_s14 = smov (!%p191_p9), 12   ;;  %s1810_s15 = smov (!%p191_p9), 3  }
  0x11   : > { %s1811_s16 = smov (!%p191_p9), 21   ;;  %s1812_s17 = smov (!%p191_p9), 24  }
  0x12   : > { %s215_s23 = sand.u32 (!%p191_p9), 1, %s1795_s19  }
  0x13   : > { %s218_s30 = scalar_select %p217_p10, %s1865_s22, 1  ;;  %vm630_vm0 = vcmask 1046528   ;;  %vm405_vm1 = vsmask.f32 7424  ;;  %vm1265_vm2 = vcmask 1044480   ;;  %vm1266_vm3 = vcmask 1045504  }
  0x14   : > { %vm949_vm4 = vcmask 23552   ;;  %vm982_vm5 = vcmask 48128   ;;  %vm1015_vm6 = vcmask 72704   ;;  %vm1048_vm7 = vcmask 97280   ;;  %s216_s8 = scalar_lea.vmem [#allocation2], %s215_s23 }
  0x15   : > { %s1691_s6 = smul.u32 216, %s218_s30  ;;  %vm1081_vm8 = vcmask 121856   ;;  %vm1114_vm9 = vcmask 146432   ;;  %vm1147_vm10 = vcmask 171008   ;;  %vm1180_vm11 = vcmask 195584   ;;  %s1502_s30 = scalar_lea.hbm %s2705_s5, %s1865_s22 }
  0x16   : > { %vm1232_vm12 = vcmask 220160   ;;  %vm1393_vm13 = vcmask 261120  }
  0x17   : > { %s1897_s9 = scalar_lea.vmem %s2700_s0, %s1691_s6 }
  0x18   : > { %v1900_v0 = vld [vmem:[%s1897_s9 + $0xc] sm:$0xff]  ;;  %v1903_v1 = vld [vmem:[%s1897_s9 + $0x18] sm:$0xff]  ;;  %v1906_v2 = vld [vmem:[%s1897_s9] sm:$0xff] }
  0x19   : > { %v225_v3 = vld [vmem:[%s1897_s9 + $0x8] sm:$0x1]  ;;  %v228_v4 = vld [vmem:[%s1897_s9 + $0x14] sm:$0x1]  ;;  %v231_v5 = vld [vmem:[%s1897_s9 + $0x20] sm:$0x1]  ;;  %716 = vrot.lane.b32.xlu1 %v1900_v0, %s1805_s10 }
  0x1a   : > { %835 = vrot.lane.b32.xlu2 %v1903_v1, %s1806_s11  ;;  %v373_v6 = vunpack.c.l.b16 %v225_v3  ;;  %v631_v7 = vrot.slane %v1906_v2, 1  ;;  %v374_v8 = vunpack.c.l.b16 %v228_v4  ;;  %v243_v9 = vld [vmem:[%s1897_s9 + $0x50] sm:$0x1]  ;;  %v419_v10 = vshrl.u32 %v1900_v0, 16  ;;  %v1924_v26 = vld [vmem:[%s1897_s9 + $0x48] sm:$0xff]  ;;  %v1934_v34 = vld [vmem:[%s1897_s9 + $0x54] sm:$0xff] }
  0x1b   : > { %v421_v11 = vshll.u32 %v1900_v0, 16  ;;  %v634_v12 = vrot.slane %v1900_v0, 1  ;;  %v409_v13 = vshll.u32 %v1906_v2, 16  ;;  %v407_v16 = vshrl.u32 %v1906_v2, 16  ;;  %v246_v35 = vld [vmem:[%s1897_s9 + $0x5c] sm:$0x1] }
  0x1c   : > { %v389_v14 = vpack.c.b16 %v373_v6, %v373_v6  ;;  %v390_v15 = vpack.c.b16 %v374_v8, %v374_v8  ;;  %v375_v17 = vunpack.c.l.b16 %v231_v5  ;;  %v433_v20 = vshll.u32 %v1903_v1, 16  ;;  %v249_v48 = vld [vmem:[%s1897_s9 + $0x68] sm:$0x1]  ;;  %v1957_v58 = vld [vmem:[%s1897_s9 + $0x60] sm:$0xff] }
  0x1d   : > { %v423_v18 = vrot.slane %v421_v11, 1  ;;  %v411_v19 = vrot.slane %v409_v13, 1  ;;  %v379_v21 = vunpack.c.l.b16 %v243_v9  ;;  %v431_v29 = vshrl.u32 %v1903_v1, 16 }
  0x1e   : > { %v632_v22 = vrot.slane %v389_v14, 1  ;;  %v426_v23 = vshll.u32 %v390_v15, 16  ;;  %v635_v24 = vrot.slane %v390_v15, 1  ;;  %v414_v25 = vshll.u32 %v389_v14, 16 }
  0x1f   : > { %v424_v27 = vor.u32 %v423_v18, %v419_v10  ;;  %v1926_v28 = vpack.c.b16 %v375_v17, %v375_v17  ;;  %v435_v33 = vrot.slane %v433_v20, 1  ;;  %v412_v36 = vor.u32 %v411_v19, %v407_v16  ;;  %v234_v19 = vld [vmem:[%s1897_s9 + $0x2c] sm:$0x1] }
  0x20   : > { %v633_v30 = vsel %vm630_vm0, %v631_v7, %v632_v22  ;;  %v428_v31 = vrot.slane %v426_v23, 1  ;;  %v1931_v32 = vsel %vm630_vm0, %v634_v12, %v635_v24  ;;  %v416_v37 = vrot.slane %v414_v25, 1 }
  0x21   : > { %679 = vrot.lane.b32.xlu0 %v633_v30, %s1807_s12  ;;  %v438_v38 = vshll.u32 %v1926_v28, 16  ;;  %v395_v39 = vpack.c.b16 %v379_v21, %v379_v21  ;;  %v481_v41 = vshll.u32 %v1924_v26, 16  ;;  %v649_v42 = vrot.slane %v1924_v26, 1  ;;  %v2001_v21 = vld [vmem:[%s1897_s9 + $0x24] sm:$0xff] }
  0x22   : > { %v1940_v40 = vsel %vm405_vm1, %v424_v27, %v428_v31  ;;  %798 = vrot.lane.b32.xlu2 %v1931_v32, %s1808_s13  ;;  %v380_v44 = vunpack.c.l.b16 %v246_v35  ;;  %v436_v45 = vor.u32 %v435_v33, %v431_v29  ;;  %v493_v47 = vshll.u32 %v1934_v34, 16  ;;  %v258_v35 = vld [vmem:[%s1897_s9 + $0x8c] sm:$0x1] }
  0x23   : > { %763 = vrot.lane.b32.xlu1 %v1940_v40, %s1809_s14  ;;  %v650_v43 = vrot.slane %v395_v39, 1  ;;  %v440_v46 = vrot.slane %v438_v38, 1  ;;  %v417_v49 = vsel %vm405_vm1, %v412_v36, %v416_v37  ;;  %v479_v51 = vshrl.u32 %v1924_v26, 16  ;;  %v2026_v37 = vld [vmem:[%s1897_s9 + $0x84] sm:$0xff] }
  0x24   : > { %v396_v50 = vpack.c.b16 %v380_v44, %v380_v44  ;;  %v483_v52 = vrot.slane %v481_v41, 1  ;;  %v486_v53 = vshll.u32 %v395_v39, 16  ;;  %v491_v54 = vshrl.u32 %v1934_v34, 16 }
  0x25   : > { %v1954_v55 = vsel %vm630_vm0, %v649_v42, %v650_v43  ;;  %v495_v56 = vrot.slane %v493_v47, 1  ;;  %v381_v59 = vunpack.c.l.b16 %v249_v48  ;;  %v1960_v60 = vsel %vm405_vm1, %v436_v45, %v440_v46 }
  0x26   : > { %v498_v57 = vshll.u32 %v396_v50, 16  ;;  %v484_v61 = vor.u32 %v483_v52, %v479_v51  ;;  %v488_v62 = vrot.slane %v486_v53, 1  ;;  %v505_v5 = vshll.u32 %v1957_v58, 16  ;;  %v2051_v51 = vld [vmem:[%s1897_s9 + $0x90] sm:$0xff] }
  0x27   : > { %v496_v63 = vor.u32 %v495_v56, %v491_v54  ;;  %v397_v4 = vpack.c.b16 %v381_v59, %v381_v59  ;;  %v503_v8 = vshrl.u32 %v1957_v58, 16  ;;  %v637_v11 = vrot.slane %v1903_v1, 1  ;;  %v252_v53 = vld [vmem:[%s1897_s9 + $0x74] sm:$0x1]  ;;  %v2062_v59 = vld [vmem:[%s1897_s9 + $0x6c] sm:$0xff] }
  0x28   : > { %v500_v3 = vrot.slane %v498_v57, 1  ;;  %v1969_v6 = vsel %vm405_vm1, %v484_v61, %v488_v62  ;;  %v507_v9 = vrot.slane %v505_v5, 1  ;;  %v638_v12 = vrot.slane %v1926_v28, 1 }
  0x29   : > { %598 = vrot.lane.b32.xlu0 %v417_v49, %s1810_s15  ;;  %v510_v10 = vshll.u32 %v397_v4, 16  ;;  %v652_v17 = vrot.slane %v1934_v34, 1  ;;  %v653_v18 = vrot.slane %v396_v50, 1  ;;  %v376_v22 = vunpack.c.l.b16 %v234_v19  ;;  %v261_v49 = vld [vmem:[%s1897_s9 + $0x98] sm:$0x1] }
  0x2a   : > { %691 = vrot.lane.b32.xlu2 %v1954_v55, %s1807_s12  ;;  %v1972_v7 = vsel %vm405_vm1, %v496_v63, %v500_v3  ;;  %v508_v13 = vor.u32 %v507_v9, %v503_v8  ;;  %v1984_v15 = vsel %vm630_vm0, %v637_v11, %v638_v12  ;;  %v655_v23 = vrot.slane %v1957_v58, 1 }
  0x2b   : > { %882 = vrot.lane.b32.xlu1 %v1960_v60, %s1811_s16  ;;  %v512_v14 = vrot.slane %v510_v10, 1  ;;  %v1998_v20 = vsel %vm630_vm0, %v652_v17, %v653_v18  ;;  %v656_v24 = vrot.slane %v397_v4, 1  ;;  %v392_v25 = vpack.c.b16 %v376_v22, %v376_v22 }
  0x2c   : > { %v445_v27 = vshll.u32 %v2001_v21, 16  ;;  %v443_v29 = vshrl.u32 %v2001_v21, 16  ;;  %v384_v38 = vunpack.c.l.b16 %v258_v35  ;;  %v640_v39 = vrot.slane %v2001_v21, 1 }
  0x2d   : > { %v1987_v16 = vsel %vm405_vm1, %v508_v13, %v512_v14  ;;  %v2012_v28 = vsel %vm630_vm0, %v655_v23, %v656_v24  ;;  %v450_v31 = vshll.u32 %v392_v25, 16  ;;  %v541_v42 = vshll.u32 %v2026_v37, 16  ;;  %v264_v23 = vld [vmem:[%s1897_s9 + $0xa4] sm:$0x1] }
  0x2e   : > { %v447_v30 = vrot.slane %v445_v27, 1  ;;  %v400_v41 = vpack.c.b16 %v384_v38, %v384_v38  ;;  %v539_v44 = vshrl.u32 %v2026_v37, 16  ;;  %v385_v52 = vunpack.c.l.b16 %v261_v49 }
  0x2f   : > { %v452_v33 = vrot.slane %v450_v31, 1  ;;  %v543_v45 = vrot.slane %v541_v42, 1  ;;  %v382_v54 = vunpack.c.l.b16 %v252_v53  ;;  %v553_v57 = vshll.u32 %v2051_v51, 16  ;;  %v2097_v31 = vld [vmem:[%s1897_s9 + $0x9c] sm:$0xff]  ;;  %v237_v42 = vld [vmem:[%s1897_s9 + $0x38] sm:$0x1] }
  0x30   : > { %v546_v46 = vshll.u32 %v400_v41, 16  ;;  %v401_v56 = vpack.c.b16 %v385_v52, %v385_v52  ;;  %v551_v62 = vshrl.u32 %v2051_v51, 16  ;;  %v664_v4 = vrot.slane %v2026_v37, 1  ;;  %v1644_v53 = vld [vmem:[%s2701_s1 + $0x8] sm:$0xf] }
  0x31   : > { %610 = vrot.lane.b32.xlu0 %v1969_v6, %s1810_s15  ;;  %v544_v47 = vor.u32 %v543_v45, %v539_v44  ;;  %v398_v61 = vpack.c.b16 %v382_v54, %v382_v54  ;;  %v555_v63 = vrot.slane %v553_v57, 1  ;;  %v665_v5 = vrot.slane %v400_v41, 1  ;;  %v1684_v54 = vld [vmem:[%s2701_s1 + $0x8] sm:$0x30] }
  0x32   : > { %775 = vrot.lane.b32.xlu2 %v1972_v7, %s1809_s14  ;;  %v548_v48 = vrot.slane %v546_v46, 1  ;;  %v558_v3 = vshll.u32 %v401_v56, 16  ;;  %v517_v8 = vshll.u32 %v2062_v59, 16  ;;  %v658_v9 = vrot.slane %v2062_v59, 1 }
  0x33   : > { %728 = vrot.lane.b32.xlu1 %v1934_v34, %s1805_s10  ;;  %v659_v10 = vrot.slane %v398_v61, 1  ;;  %v556_v11 = vor.u32 %v555_v63, %v551_v62  ;;  %v2075_v13 = vsel %vm630_vm0, %v664_v4, %v665_v5  ;;  %v515_v14 = vshrl.u32 %v2062_v59, 16 }
  0x34   : > { %v2048_v50 = vsel %vm405_vm1, %v544_v47, %v548_v48  ;;  %v560_v12 = vrot.slane %v558_v3, 1  ;;  %v519_v17 = vrot.slane %v517_v8, 1  ;;  %v522_v18 = vshll.u32 %v398_v61, 16  ;;  %v2119_v48 = vld [vmem:[%s1897_s9 + $0x30] sm:$0xff] }
  0x35   : > { %v2079_v19 = vsel %vm630_vm0, %v658_v9, %v659_v10  ;;  %v386_v27 = vunpack.c.l.b16 %v264_v23  ;;  %v667_v35 = vrot.slane %v2051_v51, 1  ;;  %v668_v38 = vrot.slane %v401_v56, 1 }
  0x36   : > { %v2082_v22 = vsel %vm405_vm1, %v556_v11, %v560_v12  ;;  %v520_v24 = vor.u32 %v519_v17, %v515_v14  ;;  %v563_v44 = vshrl.u32 %v2097_v31, 16  ;;  %v377_v49 = vunpack.c.l.b16 %v237_v42 }
  0x37   : > { %v2113_v46 = vsel %vm630_vm0, %v667_v35, %v668_v38  ;;  %v1645_v57 = vor.u32 %v1684_v54, %v1644_v53  ;;  %v1813_v61 = vmov 65535   ;;  %v457_v3 = vshll.u32 %v2119_v48, 16 }
  0x38   : > { %v1267_v62 = vsel %vm1265_vm2, 4294967295, %v1813_v61  ;;  %v393_v63 = vpack.c.b16 %v377_v49, %v377_v49  ;;  %v455_v10 = vshrl.u32 %v2119_v48, 16  ;;  %v2180_v49 = vld [vmem:[%s1897_s9 + $0x3c] sm:$0xff] }
  0x39   : > { %917 = vrot.lane.b32.xlu0 %v1984_v15, %s1812_s17  ;;  %v1268_v4 = vsel %vm1266_vm3, %v1267_v62, 0  ;;  %v459_v11 = vrot.slane %v457_v3, 1  ;;  %v255_v61 = vld [vmem:[%s1897_s9 + $0x80] sm:$0x1] }
  0x3a   : > { %894 = vrot.lane.b32.xlu2 %v1987_v16, %s1811_s16  ;;  %v1270_v8 = vand.u32 %v1645_v57, %v1268_v4  ;;  %v462_v12 = vshll.u32 %v393_v63, 16  ;;  %v469_v57 = vshll.u32 %v2180_v49, 16  ;;  %v383_v3 = vunpack.c.l.b16 %v255_v61 }
  0x3b   : > { %847 = vrot.lane.b32.xlu1 %v1957_v58, %s1806_s11  ;;  %v460_v14 = vor.u32 %v459_v11, %v455_v10 }
  0x3c   : > { %1278 = vmatpush.bf16.msra.mxu0 %v1270_v8  ;;  %1686 = vmatpush.bf16.msra.mxu2 %v1270_v8  ;;  %v464_v17 = vrot.slane %v462_v12, 1  ;;  %v471_v10 = vrot.slane %v469_v57, 1  ;;  %v646_v57 = vrot.slane %v2180_v49, 1 }
  0x3d   : > { %1687 = vmatpush.bf16.msra.mxu3 %v1270_v8  ;;  %1685 = vmatpush.bf16.msra.mxu1 %v1270_v8  ;;  %v467_v8 = vshrl.u32 %v2180_v49, 16 }
  0x41   : > { %810 = vrot.lane.b32.xlu0 %v1998_v20, %s1808_s13 }
  0x42   : > { %681 = vrot.lane.b32.xlu2 %v1931_v32, %s1807_s12  ;;  %v448_v32 = vor.u32 %v447_v30, %v443_v29 }
  0x43   : > { %600 = vrot.lane.b32.xlu1 %v1940_v40, %s1810_s15  ;;  %v641_v40 = vrot.slane %v392_v25, 1  ;;  %v524_v25 = vrot.slane %v522_v18, 1 }
  0x44   : > { %v2023_v36 = vsel %vm405_vm1, %v448_v32, %v452_v33  ;;  %v402_v32 = vpack.c.b16 %v386_v27, %v386_v27  ;;  %v565_v33 = vshll.u32 %v2097_v31, 16 }
  0x45   : > { %v2037_v43 = vsel %vm630_vm0, %v640_v39, %v641_v40  ;;  %v2094_v30 = vsel %vm405_vm1, %v520_v24, %v524_v25  ;;  %v670_v39 = vrot.slane %v2097_v31, 1  ;;  %v2152_v24 = vsel %vm405_vm1, %v460_v14, %v464_v17 }
  0x46   : > { %v671_v40 = vrot.slane %v402_v32, 1  ;;  %v567_v45 = vrot.slane %v565_v33, 1  ;;  %v570_v47 = vshll.u32 %v402_v32, 16  ;;  %v643_v32 = vrot.slane %v2119_v48, 1 }
  0x47   : > { %v644_v33 = vrot.slane %v393_v63, 1  ;;  %v2196_v63 = vld [vmem:[%s1897_s9 + $0x78] sm:$0xff] }
  0x48   : > { %v568_v52 = vor.u32 %v567_v45, %v563_v44  ;;  %v572_v56 = vrot.slane %v570_v47, 1  ;;  %v240_v45 = vld [vmem:[%s1897_s9 + $0x44] sm:$0x1]  ;;  %v529_v14 = vshll.u32 %v2196_v63, 16 }
  0x49   : > { %929 = vrot.lane.b32.xlu0 %v2012_v28, %s1812_s17  ;;  %v2164_v38 = vsel %vm630_vm0, %v643_v32, %v644_v33 }
  0x4a   : > { %800 = vrot.lane.b32.xlu2 %v1984_v15, %s1808_s13  ;;  %v2137_v9 = vsel %vm405_vm1, %v568_v52, %v572_v56  ;;  %v378_v52 = vunpack.c.l.b16 %v240_v45 }
  0x4b   : > { %765 = vrot.lane.b32.xlu1 %v1960_v60, %s1809_s14 }
  0x4c   : > { %v394_v56 = vpack.c.b16 %v378_v52, %v378_v52 }
  0x4e   : > { %v474_v11 = vshll.u32 %v394_v56, 16  ;;  %v647_v61 = vrot.slane %v394_v56, 1 }
  0x50   : > { %v476_v32 = vrot.slane %v474_v11, 1 }
  0x51   : > { %718 = vrot.lane.b32.xlu0 %v1903_v1, %s1805_s10 }
  0x52   : > { %884 = vrot.lane.b32.xlu2 %v2023_v36, %s1811_s16 }
  0x53   : > { %612 = vrot.lane.b32.xlu1 %v1972_v7, %s1810_s15 }
  0x59   : > { %837 = vrot.lane.b32.xlu0 %v2001_v21, %s1806_s11 }
  0x5a   : > { %730 = vrot.lane.b32.xlu2 %v1957_v58, %s1805_s10 }
  0x5b   : > { %919 = vrot.lane.b32.xlu1 %v2037_v43, %s1812_s17 }
  0x61   : > { %693 = vrot.lane.b32.xlu0 %v1998_v20, %s1807_s12 }
  0x62   : > { %812 = vrot.lane.b32.xlu2 %v2012_v28, %s1808_s13 }
  0x63   : > { %620 = vrot.lane.b32.xlu1 %v2048_v50, %s1810_s15 }
  0x69   : > { %777 = vrot.lane.b32.xlu0 %v1987_v16, %s1809_s14 }
  0x6a   : > { %738 = vrot.lane.b32.xlu2 %v2051_v51, %s1805_s10 }
  0x6b   : > { %849 = vrot.lane.b32.xlu1 %v2062_v59, %s1806_s11 }
  0x71   : > { %701 = vrot.lane.b32.xlu0 %v2075_v13, %s1807_s12 }
  0x72   : > { %931 = vrot.lane.b32.xlu2 %v2079_v19, %s1812_s17 }
  0x73   : > { %785 = vrot.lane.b32.xlu1 %v2082_v22, %s1809_s14 }
  0x74   : > { %v2091_v29 = vpop.permute.xlu2 %835 }
  0x79   : > { %896 = vrot.lane.b32.xlu0 %v2094_v30, %s1811_s16 }
  0x7a   : > { %602 = vrot.lane.b32.xlu2 %v1960_v60, %s1810_s15  ;;  %v2116_v60 = vsel %vm630_vm0, %v670_v39, %v671_v40 }
  0x7b   : > { %857 = vrot.lane.b32.xlu1 %v2097_v31, %s1806_s11 }
  0x7c   : > { %v2108_v41 = vpop.permute.xlu2 %798 }
  0x81   : > { %820 = vrot.lane.b32.xlu0 %v2113_v46, %s1808_s13 }
  0x82   : > { %939 = vrot.lane.b32.xlu2 %v2116_v60, %s1812_s17 }
  0x83   : > { %683 = vrot.lane.b32.xlu1 %v1984_v15, %s1807_s12  ;;  %v1683_v15 = vld [vmem:[%s2701_s1] sm:$0xff] }
  0x84   : > { %v2134_v5 = vpop.permute.xlu2 %691  ;;  %1279 = vmatpush.bf16.msra.mxu0 %v1683_v15  ;;  %1689 = vmatpush.bf16.msra.mxu2 %v1683_v15 }
  0x85   : > { %1690 = vmatpush.bf16.msra.mxu3 %v1683_v15  ;;  %1688 = vmatpush.bf16.msra.mxu1 %v1683_v15 }
  0x89   : > { %904 = vrot.lane.b32.xlu0 %v2137_v9, %s1811_s16 }
  0x8a   : > { %802 = vrot.lane.b32.xlu2 %v2037_v43, %s1808_s13 }
  0x8b   : > { %767 = vrot.lane.b32.xlu1 %v2023_v36, %s1809_s14  ;;  %v717_v18 = vpop.permute.xlu1 %716 }
  0x8c   : > { %v2149_v23 = vpop.permute.xlu2 %775 }
  0x91   : > { %720 = vrot.lane.b32.xlu0 %v2001_v21, %s1805_s10 }
  0x92   : > { %886 = vrot.lane.b32.xlu2 %v2152_v24, %s1811_s16 }
  0x93   : > { %v680_v25 = vpop.permute.xlu0 %679  ;;  %614 = vrot.lane.b32.xlu1 %v1987_v16, %s1810_s15 }
  0x94   : > { %v2160_v27 = vpop.permute.xlu2 %894 }
  0x95   : > { %v764_v35 = vpop.permute.xlu1 %763 }
  0x99   : > { %839 = vrot.lane.b32.xlu0 %v2119_v48, %s1806_s11 }
  0x9a   : > { %606 = vrot.lane.b32.xlu2 %v2152_v24, %s1810_s15 }
  0x9b   : > { %v599_v16 = vpop.permute.xlu0 %598  ;;  %921 = vrot.lane.b32.xlu1 %v2164_v38, %s1812_s17 }
  0x9c   : > { %v951_v39 = vsel %vm949_vm4, %v1906_v2, %v599_v16  ;;  %v2174_v40 = vpop.permute.xlu2 %681  ;;  %v527_v16 = vshrl.u32 %v2196_v63, 16 }
  0x9d   : > { %v984_v42 = vsel %vm982_vm5, %v951_v39, %v680_v25  ;;  %v883_v44 = vpop.permute.xlu1 %882  ;;  %v472_v25 = vor.u32 %v471_v10, %v467_v8  ;;  %v531_v39 = vrot.slane %v529_v14, 1  ;;  %v2239_v8 = vsel %vm630_vm0, %v646_v57, %v647_v61 }
  0x9e   : > { %v1017_v47 = vsel %vm1015_vm6, %v984_v42, %v717_v18  ;;  %v661_v10 = vrot.slane %v2196_v63, 1 }
  0x9f   : > { %v1050_v2 = vsel %vm1048_vm7, %v1017_v47, %v764_v35 }
  0xa1   : > { %695 = vrot.lane.b32.xlu0 %v2012_v28, %s1807_s12  ;;  %v1083_v28 = vsel %vm1081_vm8, %v1050_v2, %v2108_v41 }
  0xa2   : > { %779 = vrot.lane.b32.xlu2 %v2094_v30, %s1809_s14  ;;  %v1116_v4 = vsel %vm1114_vm9, %v1083_v28, %v2091_v29  ;;  %v399_v29 = vpack.c.b16 %v383_v3, %v383_v3 }
  0xa3   : > { %v611_v53 = vpop.permute.xlu0 %610  ;;  %687 = vrot.lane.b32.xlu1 %v2164_v38, %s1807_s12  ;;  %v1149_v41 = vsel %vm1147_vm10, %v1116_v4, %v883_v44  ;;  %v2219_v44 = vsel %vm405_vm1, %v472_v25, %v476_v32  ;;  %v2257_v25 = vld [vmem:[%s1897_s9 + $0xa8] sm:$0xff] }
  0xa4   : > { %v2189_v54 = vpop.permute.xlu2 %800  ;;  %v963_v12 = vsel %vm949_vm4, %v1924_v26, %v611_v53  ;;  %v534_v42 = vshll.u32 %v399_v29, 16  ;;  %v662_v11 = vrot.slane %v399_v29, 1 }
  0xa5   : > { %v729_v62 = vpop.permute.xlu1 %728  ;;  %v996_v35 = vsel %vm982_vm5, %v963_v12, %v2134_v5  ;;  %v532_v5 = vor.u32 %v531_v39, %v527_v16 }
  0xa6   : > { %v1029_v45 = vsel %vm1015_vm6, %v996_v35, %v729_v62  ;;  %v536_v52 = vrot.slane %v534_v42, 1  ;;  %v577_v35 = vshll.u32 %v2257_v25, 16 }
  0xa7   : > { %v1062_v2 = vsel %vm1048_vm7, %v1029_v45, %v2149_v23  ;;  %v575_v45 = vshrl.u32 %v2257_v25, 16 }
  0xa8   : > { %v2235_v3 = vsel %vm405_vm1, %v532_v5, %v536_v52 }
  0xa9   : > { %732 = vrot.lane.b32.xlu0 %v2062_v59, %s1805_s10 }
  0xaa   : > { %814 = vrot.lane.b32.xlu2 %v2079_v19, %s1808_s13 }
  0xab   : > { %v918_v15 = vpop.permute.xlu0 %917  ;;  %724 = vrot.lane.b32.xlu1 %v2180_v49, %s1805_s10 }
  0xac   : > { %v1182_v17 = vsel %vm1180_vm11, %v1149_v41, %v918_v15  ;;  %v2212_v18 = vpop.permute.xlu2 %884  ;;  %v267_v15 = vld [vmem:[%s1897_s9 + $0xb0] sm:$0x1] }
  0xad   : > { %1646 = vmatmul.msk.bf16.vlgmr.msra.gmra.mxu0 %vm1232_vm12, %v1182_v17  ;;  %v848_v33 = vpop.permute.xlu1 %847  ;;  %v2254_v17 = vsel %vm630_vm0, %v661_v10, %v662_v11  ;;  %v387_v32 = vunpack.c.l.b16 %v267_v15 }
  0xaf   : > { %v403_v29 = vpack.c.b16 %v387_v32, %v387_v32 }
  0xb1   : > { %622 = vrot.lane.b32.xlu0 %v2082_v22, %s1810_s15  ;;  %v582_v5 = vshll.u32 %v403_v29, 16 }
  0xb2   : > { %851 = vrot.lane.b32.xlu2 %v2196_v63, %s1806_s11 }
  0xb3   : > { %v811_v47 = vpop.permute.xlu0 %810  ;;  %771 = vrot.lane.b32.xlu1 %v2219_v44, %s1809_s14  ;;  %v584_v61 = vrot.slane %v582_v5, 1 }
  0xb4   : > { %v2230_v53 = vpop.permute.xlu2 %730  ;;  %v1095_v28 = vsel %vm1081_vm8, %v1062_v2, %v811_v47  ;;  %v579_v47 = vrot.slane %v577_v35, 1 }
  0xb5   : > { %v601_v62 = vpop.permute.xlu1 %600  ;;  %v1128_v4 = vsel %vm1114_vm9, %v1095_v28, %v848_v33 }
  0xb6   : > { %v1161_v56 = vsel %vm1147_vm10, %v1128_v4, %v2160_v27  ;;  %v953_v33 = vsel %vm949_vm4, %v1900_v0, %v601_v62  ;;  %v580_v57 = vor.u32 %v579_v47, %v575_v45 }
  0xb7   : > { %v986_v16 = vsel %vm982_vm5, %v953_v33, %v2174_v40 }
  0xb8   : > { %v2289_v10 = vsel %vm405_vm1, %v580_v57, %v584_v61 }
  0xb9   : > { %703 = vrot.lane.b32.xlu0 %v2113_v46, %s1807_s12 }
  0xba   : > { %898 = vrot.lane.b32.xlu2 %v2235_v3, %s1811_s16 }
  0xbb   : > { %v930_v23 = vpop.permute.xlu0 %929  ;;  %806 = vrot.lane.b32.xlu1 %v2239_v8, %s1808_s13 }
  0xbc   : > { %v1194_v41 = vsel %vm1180_vm11, %v1161_v56, %v930_v23  ;;  %v813_v12 = vpop.permute.xlu2 %812 }
  0xbd   : > { %1652 = vmatmul.msk.bf16.vlgmr.msra.gmra.mxu2 %vm1232_vm12, %v1194_v41  ;;  %v766_v14 = vpop.permute.xlu1 %765  ;;  %v674_v41 = vrot.slane %v403_v29, 1 }
  0xc1   : > { %740 = vrot.lane.b32.xlu0 %v2097_v31, %s1805_s10 }
  0xc2   : > { %933 = vrot.lane.b32.xlu2 %v2254_v17, %s1812_s17 }
  0xc3   : > { %v719_v27 = vpop.permute.xlu0 %718  ;;  %843 = vrot.lane.b32.xlu1 %v1924_v26, %s1806_s11 }
  0xc4   : > { %v2270_v39 = vpop.permute.xlu2 %738  ;;  %v1019_v0 = vsel %vm1015_vm6, %v986_v16, %v719_v27 }
  0xc5   : > { %v613_v42 = vpop.permute.xlu1 %612  ;;  %v1052_v52 = vsel %vm1048_vm7, %v1019_v0, %v766_v14 }
  0xc6   : > { %v1085_v40 = vsel %vm1081_vm8, %v1052_v52, %v2189_v54  ;;  %v965_v27 = vsel %vm949_vm4, %v1934_v34, %v613_v42 }
  0xc9   : > { %787 = vrot.lane.b32.xlu0 %v2137_v9, %s1809_s14 }
  0xca   : > { %859 = vrot.lane.b32.xlu2 %v2257_v25, %s1806_s11 }
  0xcb   : > { %v838_v2 = vpop.permute.xlu0 %837  ;;  %890 = vrot.lane.b32.xlu1 %v1969_v6, %s1811_s16 }
  0xcc   : > { %v1118_v28 = vsel %vm1114_vm9, %v1085_v40, %v838_v2  ;;  %v932_v62 = vpop.permute.xlu2 %931 }
  0xcd   : > { %v920_v4 = vpop.permute.xlu1 %919  ;;  %v1151_v23 = vsel %vm1147_vm10, %v1118_v28, %v2212_v18  ;;  %v673_v18 = vrot.slane %v2257_v25, 1 }
  0xce   : > { %v1184_v56 = vsel %vm1180_vm11, %v1151_v23, %v920_v4 }
  0xcf   : > { %1647 = vmatmul.msk.bf16.gmra.mxu0 %vm1232_vm12, %v1184_v56  ;;  %v2299_v14 = vsel %vm630_vm0, %v673_v18, %v674_v41 }
  0xd1   : > { %822 = vrot.lane.b32.xlu0 %v2116_v60, %s1808_s13 }
  0xd2   : > { %906 = vrot.lane.b32.xlu2 %v2289_v10, %s1811_s16 }
  0xd3   : > { %v694_v54 = vpop.permute.xlu0 %693  ;;  %604 = vrot.lane.b32.xlu1 %v2023_v36, %s1810_s15 }
  0xd4   : > { %v603_v11 = vpop.permute.xlu2 %602  ;;  %v998_v29 = vsel %vm982_vm5, %v965_v27, %v694_v54 }
  0xd5   : > { %v621_v15 = vpop.permute.xlu1 %620  ;;  %v1031_v16 = vsel %vm1015_vm6, %v998_v29, %v2230_v53  ;;  %v955_v54 = vsel %vm949_vm4, %v1903_v1, %v603_v11 }
  0xd9   : > { %925 = vrot.lane.b32.xlu0 %v1954_v55, %s1812_s17 }
  0xda   : > { %722 = vrot.lane.b32.xlu2 %v2119_v48, %s1805_s10 }
  0xdb   : > { %v778_v32 = vpop.permute.xlu0 %777  ;;  %941 = vrot.lane.b32.xlu1 %v2299_v14, %s1812_s17 }
  0xdc   : > { %v940_v33 = vpop.permute.xlu2 %939  ;;  %v1064_v45 = vsel %vm1048_vm7, %v1031_v16, %v778_v32 }
  0xdd   : > { %v850_v36 = vpop.permute.xlu1 %849  ;;  %v1097_v42 = vsel %vm1081_vm8, %v1064_v45, %v813_v12 }
  0xe1   : > { %685 = vrot.lane.b32.xlu0 %v2037_v43, %s1807_s12  ;;  %v1130_v43 = vsel %vm1114_vm9, %v1097_v42, %v850_v36 }
  0xe2   : > { %841 = vrot.lane.b32.xlu2 %v2180_v49, %s1806_s11 }
  0xe3   : > { %v702_v35 = vpop.permute.xlu0 %701  ;;  %804 = vrot.lane.b32.xlu1 %v2164_v38, %s1808_s13 }
  0xe4   : > { %v803_v0 = vpop.permute.xlu2 %802 }
  0xe5   : > { %v786_v47 = vpop.permute.xlu1 %785 }
  0xe9   : > { %769 = vrot.lane.b32.xlu0 %v2152_v24, %s1809_s14  ;;  %v973_v24 = vsel %vm949_vm4, %v2026_v37, %v621_v15 }
  0xea   : > { %697 = vrot.lane.b32.xlu2 %v2079_v19, %s1807_s12  ;;  %v1006_v12 = vsel %vm982_vm5, %v973_v24, %v702_v35 }
  0xeb   : > { %v897_v5 = vpop.permute.xlu0 %896  ;;  %888 = vrot.lane.b32.xlu1 %v2219_v44, %s1811_s16  ;;  %v1039_v2 = vsel %vm1015_vm6, %v1006_v12, %v2270_v39 }
  0xec   : > { %v1163_v38 = vsel %vm1147_vm10, %v1130_v43, %v897_v5  ;;  %v887_v53 = vpop.permute.xlu2 %886  ;;  %v1072_v28 = vsel %vm1048_vm7, %v1039_v2, %v786_v47 }
  0xed   : > { %v858_v52 = vpop.permute.xlu1 %857  ;;  %v1196_v40 = vsel %vm1180_vm11, %v1163_v38, %v932_v62 }
  0xee   : > { %1653 = vmatmul.msk.bf16.gmra.mxu2 %vm1232_vm12, %v1196_v40 }
  0xf1   : > { %616 = vrot.lane.b32.xlu0 %v2094_v30, %s1810_s15 }
  0xf2   : > { %734 = vrot.lane.b32.xlu2 %v2196_v63, %s1805_s10 }
  0xf3   : > { %v821_v19 = vpop.permute.xlu0 %820  ;;  %608 = vrot.lane.b32.xlu1 %v2219_v44, %s1810_s15 }
  0xf4   : > { %v2341_v57 = vpop.permute.xlu2 %606  ;;  %v1105_v62 = vsel %vm1081_vm8, %v1072_v28, %v821_v19 }
  0xf5   : > { %v684_v61 = vpop.permute.xlu1 %683  ;;  %v1138_v30 = vsel %vm1114_vm9, %v1105_v62, %v858_v52  ;;  %v2400_v52 = vld [vmem:[%s1897_s9 + $0xb4] sm:$0xff] }
  0xf6   : > { %v988_v18 = vsel %vm982_vm5, %v955_v54, %v684_v61  ;;  %v589_v19 = vshll.u32 %v2400_v52, 16  ;;  %v676_v61 = vrot.slane %v2400_v52, 1 }
  0xf9   : > { %923 = vrot.lane.b32.xlu0 %v2239_v8, %s1812_s17 }
  0xfa   : > { %624 = vrot.lane.b32.xlu2 %v2137_v9, %s1810_s15 }
  0xfb   : > { %v905_v4 = vpop.permute.xlu0 %904  ;;  %781 = vrot.lane.b32.xlu1 %v2235_v3, %s1809_s14 }
  0xfc   : > { %v1171_v44 = vsel %vm1147_vm10, %v1138_v30, %v905_v4  ;;  %v780_v39 = vpop.permute.xlu2 %779  ;;  %v591_v4 = vrot.slane %v589_v19, 1 }
  0xfd   : > { %v768_v23 = vpop.permute.xlu1 %767  ;;  %v1204_v56 = vsel %vm1180_vm11, %v1171_v44, %v940_v33 }
  0xfe   : > { %1657 = vmatmul.msk.bf16.vlgmr.msra.gmra.mxu3 %vm1232_vm12, %v1204_v56 }
 0x101   : > { %689 = vrot.lane.b32.xlu0 %v2239_v8, %s1807_s12 }
 0x102   : > { %705 = vrot.lane.b32.xlu2 %v2116_v60, %s1807_s12 }
 0x103   : > { %v721_v9 = vpop.permute.xlu0 %720  ;;  %816 = vrot.lane.b32.xlu1 %v2254_v17, %s1808_s13 }
 0x104   : > { %v815_v41 = vpop.permute.xlu2 %814  ;;  %v1021_v15 = vsel %vm1015_vm6, %v988_v18, %v721_v9 }
 0x105   : > { %v615_v32 = vpop.permute.xlu1 %614  ;;  %v1054_v33 = vsel %vm1048_vm7, %v1021_v15, %v768_v23 }
 0x106   : > { %v1087_v1 = vsel %vm1081_vm8, %v1054_v33, %v803_v0  ;;  %v270_v0 = vld [vmem:[%s1897_s9 + $0xbc] sm:$0x1]  ;;  %v967_v45 = vsel %vm949_vm4, %v1957_v58, %v615_v32  ;;  %v273_v33 = vld [vmem:[%s1897_s9 + $0xc8] sm:$0x1] }
 0x107   : > { %v388_v5 = vunpack.c.l.b16 %v270_v0 }
 0x109   : > { %726 = vrot.lane.b32.xlu0 %v1924_v26, %s1805_s10  ;;  %v404_v24 = vpack.c.b16 %v388_v5, %v388_v5 }
 0x10a   : > { %742 = vrot.lane.b32.xlu2 %v2257_v25, %s1805_s10 }
 0x10b   : > { %v840_v60 = vpop.permute.xlu0 %839  ;;  %853 = vrot.lane.b32.xlu1 %v2026_v37, %s1806_s11  ;;  %v677_v28 = vrot.slane %v404_v24, 1  ;;  %v594_v44 = vshll.u32 %v404_v24, 16 }
 0x10c   : > { %v1120_v8 = vsel %vm1114_vm9, %v1087_v1, %v840_v60  ;;  %v852_v11 = vpop.permute.xlu2 %851  ;;  %v749_v1 = vunpack.c.l.b16 %v273_v33 }
 0x10d   : > { %v922_v36 = vpop.permute.xlu1 %921  ;;  %v1153_v27 = vsel %vm1147_vm10, %v1120_v8, %v887_v53  ;;  %v596_v23 = vrot.slane %v594_v44, 1  ;;  %v1682_v44 = vld [vmem:[%s1897_s9 + $0xcc] sm:$0xff] }
 0x10e   : > { %v1186_v29 = vsel %vm1180_vm11, %v1153_v27, %v922_v36  ;;  %v871_v33 = vshrl.u32 %v1682_v44, 16 }
 0x10f   : > { %1648 = vmatmul.msk.bf16.gmra.mxu0 %vm1232_vm12, %v1186_v29 }
 0x111   : > { %773 = vrot.lane.b32.xlu0 %v1969_v6, %s1809_s14 }
 0x112   : > { %789 = vrot.lane.b32.xlu2 %v2289_v10, %s1809_s14 }
 0x113   : > { %v696_v26 = vpop.permute.xlu0 %695  ;;  %900 = vrot.lane.b32.xlu1 %v2048_v50, %s1811_s16 }
 0x114   : > { %v899_v35 = vpop.permute.xlu2 %898  ;;  %v1000_v6 = vsel %vm982_vm5, %v967_v45, %v696_v26 }
 0x115   : > { %v2383_v16 = vpop.permute.xlu1 %687 }
 0x119   : > { %808 = vrot.lane.b32.xlu0 %v1954_v55, %s1808_s13 }
 0x11a   : > { %824 = vrot.lane.b32.xlu2 %v2299_v14, %s1808_s13 }
 0x11b   : > { %v733_v47 = vpop.permute.xlu0 %732  ;;  %935 = vrot.lane.b32.xlu1 %v2075_v13, %s1812_s17 }
 0x11c   : > { %v1033_v42 = vsel %vm1015_vm6, %v1000_v6, %v733_v47  ;;  %v934_v43 = vpop.permute.xlu2 %933 }
 0x11d   : > { %v1066_v38 = vsel %vm1048_vm7, %v1033_v42, %v780_v39  ;;  %v725_v55 = vpop.permute.xlu1 %724  ;;  %v2415_v39 = vsel %vm630_vm0, %v676_v61, %v677_v28 }
 0x11e   : > { %v1099_v53 = vsel %vm1081_vm8, %v1066_v38, %v815_v41 }
 0x11f   : > { %v1132_v58 = vsel %vm1114_vm9, %v1099_v53, %v852_v11 }
 0x120   : > { %v1165_v40 = vsel %vm1147_vm10, %v1132_v58, %v899_v35 }
 0x121   : > { %845 = vrot.lane.b32.xlu0 %v1934_v34, %s1806_s11  ;;  %v1198_v12 = vsel %vm1180_vm11, %v1165_v40, %v934_v43  ;;  %v587_v34 = vshrl.u32 %v2400_v52, 16 }
 0x122   : > { %1654 = vmatmul.msk.bf16.gmra.mxu2 %vm1232_vm12, %v1198_v12  ;;  %927 = vrot.lane.b32.xlu2 %v1998_v20, %s1812_s17 }
 0x123   : > { %v623_v2 = vpop.permute.xlu0 %622  ;;  %861 = vrot.lane.b32.xlu1 %v2400_v52, %s1806_s11  ;;  %v592_v20 = vor.u32 %v591_v4, %v587_v34 }
 0x124   : > { %v860_v62 = vpop.permute.xlu2 %859 }
 0x125   : > { %v772_v30 = vpop.permute.xlu1 %771  ;;  %v2424_v18 = vsel %vm405_vm1, %v592_v20, %v596_v23 }
 0x129   : > { %892 = vrot.lane.b32.xlu0 %v1972_v7, %s1811_s16 }
 0x12a   : > { %618 = vrot.lane.b32.xlu2 %v2235_v3, %s1810_s15 }
 0x12b   : > { %v704_v56 = vpop.permute.xlu0 %703  ;;  %943 = vrot.lane.b32.xlu1 %v2415_v39, %s1812_s17 }
 0x12c   : > { %v907_v9 = vpop.permute.xlu2 %906 }
 0x12d   : > { %v807_v54 = vpop.permute.xlu1 %806 }
 0x131   : > { %908 = vrot.lane.b32.xlu0 %v2424_v18, %s1811_s16 }
 0x132   : > { %783 = vrot.lane.b32.xlu2 %v2048_v50, %s1809_s14  ;;  %v1681_v50 = vld [vmem:[%s1897_s9 + $0xc0] sm:$0xff] }
 0x133   : > { %v741_v7 = vpop.permute.xlu0 %740  ;;  %736 = vrot.lane.b32.xlu1 %v2026_v37, %s1805_s10  ;;  %v959_v37 = vsel %vm949_vm4, %v2119_v48, %v2341_v57  ;;  %v750_v57 = vpack.c.b16 %v749_v1, %v749_v1  ;;  %v754_v8 = vshll.u32 %v1681_v50, 16  ;;  %v752_v26 = vshrl.u32 %v1681_v50, 16 }
 0x134   : > { %v2432_v41 = vpop.permute.xlu2 %722  ;;  %v795_v58 = vrot.slane %v1681_v50, 1 }
 0x135   : > { %v844_v3 = vpop.permute.xlu1 %843  ;;  %v756_v35 = vrot.slane %v754_v8, 1  ;;  %v759_v0 = vshll.u32 %v750_v57, 16  ;;  %v796_v40 = vrot.slane %v750_v57, 1 }
 0x137   : > { %v757_v38 = vor.u32 %v756_v35, %v752_v26  ;;  %v797_v12 = vsel %vm630_vm0, %v795_v58, %v796_v40 }
 0x139   : > { %699 = vrot.lane.b32.xlu0 %v2254_v17, %s1807_s12  ;;  %v975_v17 = vsel %vm949_vm4, %v2051_v51, %v623_v2 }
 0x13a   : > { %707 = vrot.lane.b32.xlu2 %v2299_v14, %s1807_s12  ;;  %v992_v14 = vsel %vm982_vm5, %v959_v37, %v2383_v16  ;;  %v1008_v48 = vsel %vm982_vm5, %v975_v17, %v704_v56 }
 0x13b   : > { %v788_v15 = vpop.permute.xlu0 %787  ;;  %818 = vrot.lane.b32.xlu1 %v2075_v13, %s1808_s13 }
 0x13c   : > { %v2447_v60 = vpop.permute.xlu2 %841 }
 0x13d   : > { %v891_v32 = vpop.permute.xlu1 %890 }
 0x141   : > { %626 = vrot.lane.b32.xlu0 %v2289_v10, %s1810_s15  ;;  %v1041_v10 = vsel %vm1015_vm6, %v1008_v48, %v741_v7 }
 0x142   : > { %902 = vrot.lane.b32.xlu2 %v2082_v22, %s1811_s16  ;;  %v1074_v36 = vsel %vm1048_vm7, %v1041_v10, %v788_v15  ;;  %v1025_v22 = vsel %vm1015_vm6, %v992_v14, %v725_v55  ;;  %v761_v55 = vrot.slane %v759_v0, 1 }
 0x143   : > { %v823_v13 = vpop.permute.xlu0 %822  ;;  %744 = vrot.lane.b32.xlu1 %v2400_v52, %s1805_s10  ;;  %v1058_v29 = vsel %vm1048_vm7, %v1025_v22, %v772_v30 }
 0x144   : > { %v1107_v27 = vsel %vm1081_vm8, %v1074_v36, %v823_v13  ;;  %v1091_v16 = vsel %vm1081_vm8, %v1058_v29, %v807_v54  ;;  %v2473_v43 = vpop.permute.xlu2 %697 }
 0x145   : > { %v605_v11 = vpop.permute.xlu1 %604  ;;  %v1124_v45 = vsel %vm1114_vm9, %v1091_v16, %v844_v3  ;;  %v1140_v6 = vsel %vm1114_vm9, %v1107_v27, %v860_v62  ;;  %v276_v62 = vld [vmem:[%s1897_s9 + $0xd4] sm:$0x1]  ;;  %s1504_s9 = sshll.u32 %s216_s8, 4  ;;  %s1505_s9 = int_to_ptr.vmem [resolvable:$true] %s1504_s9 }
 0x146   : > { %v1157_v47 = vsel %vm1147_vm10, %v1124_v45, %v891_v32  ;;  %v1173_v53 = vsel %vm1147_vm10, %v1140_v6, %v907_v9  ;;  %v957_v30 = vsel %vm949_vm4, %v2001_v21, %v605_v11  ;;  %v868_v20 = vunpack.c.l.b16 %v276_v62 }
 0x147   : > { %v914_v21 = vrot.slane %v1682_v44, 1 }
 0x148   : > { %v869_v9 = vpack.c.b16 %v868_v20, %v868_v20 }
 0x149   : > { %855 = vrot.lane.b32.xlu0 %v2051_v51, %s1806_s11 }
 0x14a   : > { %826 = vrot.lane.b32.xlu2 %v2415_v39, %s1808_s13  ;;  %v915_v3 = vrot.slane %v869_v9, 1 }
 0x14b   : > { %v926_v42 = vpop.permute.xlu0 %925  ;;  %937 = vrot.lane.b32.xlu1 %v2113_v46, %s1812_s17  ;;  %v762_v46 = vsel %vm405_vm1, %v757_v38, %v761_v55 }
 0x14c   : > { %v1190_v5 = vsel %vm1180_vm11, %v1157_v47, %v926_v42  ;;  %v735_v2 = vpop.permute.xlu2 %734  ;;  %v916_v1 = vsel %vm630_vm0, %v914_v21, %v915_v3 }
 0x14d   : > { %1650 = vmatmul.msk.bf16.vlgmr.msra.gmra.mxu1 %vm1232_vm12, %v1190_v5  ;;  %v942_v51 = vpop.permute.xlu1 %941 }
 0x14e   : > { %v1206_v24 = vsel %vm1180_vm11, %v1173_v53, %v942_v51 }
 0x14f   : > { %1658 = vmatmul.msk.bf16.gmra.mxu3 %vm1232_vm12, %v1206_v24 }
 0x151   : > { %791 = vrot.lane.b32.xlu0 %v2424_v18, %s1809_s14 }
 0x152   : > { %945 = vrot.lane.b32.xlu2 %v797_v12, %s1812_s17 }
 0x153   : > { %v686_v19 = vpop.permute.xlu0 %685  ;;  %910 = vrot.lane.b32.xlu1 %v762_v46, %s1811_s16 }
 0x154   : > { %v990_v4 = vsel %vm982_vm5, %v957_v30, %v686_v19  ;;  %v625_v23 = vpop.permute.xlu2 %624 }
 0x155   : > { %v805_v61 = vpop.permute.xlu1 %804  ;;  %v1023_v56 = vsel %vm1015_vm6, %v990_v4, %v2432_v41  ;;  %v878_v41 = vshll.u32 %v869_v9, 16  ;;  %v977_v40 = vsel %vm949_vm4, %v2097_v31, %v625_v23 }
 0x157   : > { %v880_v13 = vrot.slane %v878_v41, 1 }
 0x159   : > { %863 = vrot.lane.b32.xlu0 %v1681_v50, %s1806_s11 }
 0x15a   : > { %746 = vrot.lane.b32.xlu2 %v1681_v50, %s1805_s10  ;;  %s1506_s10 = sshll.u32 %s1502_s30, 4  ;;  %s1507_s10 = int_to_ptr.hbm [resolvable:$true] %s1506_s10 }
 0x15b   : > { %v770_v28 = vpop.permute.xlu0 %769  ;;  %709 = vrot.lane.b32.xlu1 %v2415_v39, %s1807_s12  ;;  %v873_v39 = vshll.u32 %v1682_v44, 16  ;;  %s1755_s12 = sshra.s32 %s1507_s10, 4  ;;  %s1756_s12 = int_to_ptr.hbm [resolvable:$true] %s1755_s12 }
 0x15c   : > { %v1056_v54 = vsel %vm1048_vm7, %v1023_v56, %v770_v28  ;;  %v706_v37 = vpop.permute.xlu2 %705  ;;  %p1762_p0 = scmp.lt.s32.totalorder %s1756_s12, %s2705_s5 }
 0x15d   : > { %v889_v34 = vpop.permute.xlu1 %888  ;;  %v1089_v15 = vsel %vm1081_vm8, %v1056_v54, %v805_v61  ;;  %v875_v50 = vrot.slane %v873_v39, 1  ;;  %v1010_v19 = vsel %vm982_vm5, %v977_v40, %v706_v37 }
 0x15f   : > { %v876_v17 = vor.u32 %v875_v50, %v871_v33 }
 0x161   : > { %628 = vrot.lane.b32.xlu0 %v2424_v18, %s1810_s15  ;;  %v1122_v18 = vsel %vm1114_vm9, %v1089_v15, %v2447_v60  ;;  %v881_v10 = vsel %vm405_vm1, %v876_v17, %v880_v13  ;;  %s1761_s15 = scalar_lea.hbm %s2705_s5, 2 }
 0x162   : > { %865 = vrot.lane.b32.xlu2 %v1682_v44, %s1806_s11  ;;  %v1155_v14 = vsel %vm1147_vm10, %v1122_v18, %v889_v34  ;;  %s1494_s11 = scalar_lea.sflag [#allocation3], %s215_s23 }
 0x163   : > { %v617_v7 = vpop.permute.xlu0 %616  ;;  %828 = vrot.lane.b32.xlu1 %v797_v12, %s1808_s13  ;;  %s1757_s13 = scalar_lea.hbm %s1756_s12, 1 }
 0x164   : > { %v743_v60 = vpop.permute.xlu2 %742  ;;  %v969_v26 = vsel %vm949_vm4, %v2062_v59, %v617_v7  ;;  %p1758_p11 = scmp.ne.s32.totalorder %s1756_s12, %s1757_s13  ;;  %p1763_p1 = scmp.lt.s32.totalorder %s1761_s15, %s1757_s13 }
 0x165   : > { %v609_v32 = vpop.permute.xlu1 %608  ;;  %v1002_v16 = vsel %vm982_vm5, %v969_v26, %v2473_v43  ;;  %v1043_v34 = vsel %vm1015_vm6, %v1010_v19, %v743_v60 }
 0x166   : > { %v1035_v6 = vsel %vm1015_vm6, %v1002_v16, %v735_v2  ;;  %v961_v24 = vsel %vm949_vm4, %v2180_v49, %v609_v32  ;;  %p1759_p12 = pnand %p1758_p11, %p1882_p5  ;;  %p1764_p2 = por %p1763_p1, %p1762_p0 }
 0x168   : > { %p1760_p13 = pneg %p1759_p12 }
 0x169   : > { %793 = vrot.lane.b32.xlu0 %v762_v46, %s1809_s14 }
 0x16a   : > { %p1765_p3 = pnand %p1764_p2, %p1760_p13 }
 0x16b   : > { %v924_v48 = vpop.permute.xlu0 %923  ;;  %947 = vrot.lane.b32.xlu1 %v916_v1, %s1812_s17 }
 0x16c   : > { %v1188_v57 = vsel %vm1180_vm11, %v1155_v14, %v924_v48  ;;  %v790_v27 = vpop.permute.xlu2 %789 }
 0x16d   : > { %1649 = vmatmul.msk.bf16.gmra.mxu0 %vm1232_vm12, %v1188_v57  ;;  %v782_v8 = vpop.permute.xlu1 %781  ;;  %v1076_v44 = vsel %vm1048_vm7, %v1043_v34, %v790_v27 }
 0x16e   : > { %v1068_v47 = vsel %vm1048_vm7, %v1035_v6, %v782_v8 }
 0x171   : > { %912 = vrot.lane.b32.xlu0 %v881_v10, %s1811_s16 }
 0x173   : > { %v690_v11 = vpop.permute.xlu0 %689 }
 0x174   : > { %v825_v45 = vpop.permute.xlu2 %824  ;;  %v994_v46 = vsel %vm982_vm5, %v961_v24, %v690_v11 }
 0x175   : > { %v817_v36 = vpop.permute.xlu1 %816  ;;  %v1109_v20 = vsel %vm1081_vm8, %v1076_v44, %v825_v45 }
 0x176   : > { %v1101_v42 = vsel %vm1081_vm8, %v1068_v47, %v817_v36  ;;  %v1281_v47 = vpop.f32.mrf.mxu0 }
 0x17b   : > { %v727_v22 = vpop.permute.xlu0 %726 }
 0x17c   : > { %v928_v53 = vpop.permute.xlu2 %927  ;;  %v1027_v12 = vsel %vm1015_vm6, %v994_v46, %v727_v22 }
 0x17d   : > { %v854_v29 = vpop.permute.xlu1 %853 }
 0x17e   : > { %v1134_v38 = vsel %vm1114_vm9, %v1101_v42, %v854_v29 }
 0x183   : > { %v774_v35 = vpop.permute.xlu0 %773 }
 0x184   : > { %v1060_v2 = vsel %vm1048_vm7, %v1027_v12, %v774_v35  ;;  %v619_v61 = vpop.permute.xlu2 %618 }
 0x185   : > { %v901_v0 = vpop.permute.xlu1 %900  ;;  %v971_v32 = vsel %vm949_vm4, %v2196_v63, %v619_v61 }
 0x186   : > { %v1167_v55 = vsel %vm1147_vm10, %v1134_v38, %v901_v0 }
 0x18b   : > { %v809_v5 = vpop.permute.xlu0 %808 }
 0x18c   : > { %v1093_v28 = vsel %vm1081_vm8, %v1060_v2, %v809_v5  ;;  %v784_v54 = vpop.permute.xlu2 %783 }
 0x18d   : > { %v936_v51 = vpop.permute.xlu1 %935 }
 0x18e   : > { %v1200_v59 = vsel %vm1180_vm11, %v1167_v55, %v936_v51 }
 0x18f   : > { %1655 = vmatmul.msk.bf16.gmra.mxu2 %vm1232_vm12, %v1200_v59 }
 0x193   : > { %v846_v58 = vpop.permute.xlu0 %845 }
 0x194   : > { %v1126_v62 = vsel %vm1114_vm9, %v1093_v28, %v846_v58  ;;  %v708_v15 = vpop.permute.xlu2 %707  ;;  %v1283_v58 = vpop.f32.mrf.mxu0 }
 0x195   : > { %v862_v43 = vpop.permute.xlu1 %861 }
 0x196   : > { %v1142_v23 = vsel %vm1114_vm9, %v1109_v20, %v862_v43 }
 0x19b   : > { %v893_v30 = vpop.permute.xlu0 %892 }
 0x19c   : > { %v1159_v31 = vsel %vm1147_vm10, %v1126_v62, %v893_v30  ;;  %v903_v1 = vpop.permute.xlu2 %902  ;;  %v1286_v2 = vpop.f32.mrf.mxu0 }
 0x19d   : > { %v944_v4 = vpop.permute.xlu1 %943  ;;  %v1192_v49 = vsel %vm1180_vm11, %v1159_v31, %v928_v53  ;;  %v1311_v62 = vpop.f32.mrf.mxu2 }
 0x19e   : > { %1651 = vmatmul.msk.bf16.gmra.mxu1 %vm1232_vm12, %v1192_v49 }
 0x1a3   : > { %v909_v56 = vpop.permute.xlu0 %908 }
 0x1a4   : > { %v1175_v9 = vsel %vm1147_vm10, %v1142_v23, %v909_v56  ;;  %v827_v10 = vpop.permute.xlu2 %826  ;;  %v1288_v61 = vpop.f32.mrf.mxu0 }
 0x1a5   : > { %v737_v39 = vpop.permute.xlu1 %736  ;;  %v1208_v7 = vsel %vm1180_vm11, %v1175_v9, %v944_v4  ;;  %v2574_v34 = vpop.f32.mrf.mxu2  ;;  %v2579_v4 = vld [vmem:[%s2702_s2] ss:$0 sm:$0xff] }
 0x1a6   : > { %1659 = vmatmul.msk.bf16.gmra.mxu3 %vm1232_vm12, %v1208_v7  ;;  %v1284_v44 = vadd.f32 %v2579_v4, %v1283_v58  ;;  %v1282_v23 = vadd.f32 %v2579_v4, %v1281_v47  ;;  %v1287_v56 = vadd.f32 %v2579_v4, %v1286_v2  ;;  %v1289_v9 = vadd.f32 %v2579_v4, %v1288_v61 }
 0x1a8   : > { %v1363_v7 = vmax.f32 %v1287_v56, 0.0 }
 0x1ab   : > { %v700_v21 = vpop.permute.xlu0 %699 }
 0x1ac   : > { %v1004_v33 = vsel %vm982_vm5, %v971_v32, %v700_v21  ;;  %v946_v35 = vpop.permute.xlu2 %945  ;;  %v1291_v28 = vpop.f32.mrf.mxu0  ;;  %v1364_v32 = vmax.f32 %v1289_v9, 0.0 }
 0x1ad   : > { %v819_v3 = vpop.permute.xlu1 %818  ;;  %v1037_v41 = vsel %vm1015_vm6, %v1004_v33, %v737_v39  ;;  %v2582_v20 = vpop.f32.mrf.mxu2  ;;  %v1361_v39 = vmax.f32 %v1282_v23, 0.0  ;;  %v1292_v21 = vadd.f32 %v2579_v4, %v1291_v28 }
 0x1ae   : > { %v1070_v37 = vsel %vm1048_vm7, %v1037_v41, %v784_v54  ;;  %v1362_v54 = vmax.f32 %v1284_v44, 0.0 }
 0x1af   : > { %v1103_v17 = vsel %vm1081_vm8, %v1070_v37, %v819_v3  ;;  %v1394_v41 = vsel %vm1393_vm13, %v1361_v39, 0.0  ;;  %v1365_v37 = vmax.f32 %v1292_v21, 0.0 }
 0x1b3   : > { %v627_v50 = vpop.permute.xlu0 %626 }
 0x1b4   : > { %v979_v63 = vsel %vm949_vm4, %v2257_v25, %v627_v50  ;;  %v747_v5 = vpop.permute.xlu2 %746  ;;  %v1293_v30 = vpop.f32.mrf.mxu0 }
 0x1b5   : > { %v745_v18 = vpop.permute.xlu1 %744  ;;  %v1012_v11 = vsel %vm982_vm5, %v979_v63, %v708_v15  ;;  %v1395_v15 = vsel %vm1393_vm13, %v1362_v54, 0.0  ;;  %v1294_v33 = vadd.f32 %v2579_v4, %v1293_v30  ;;  %v1401_v63 = vsel %vm1393_vm13, %v1365_v37, 0.0 }
 0x1b6   : > { %v1045_v22 = vsel %vm1015_vm6, %v1012_v11, %v745_v18  ;;  %v1397_v18 = vsel %vm1393_vm13, %v1363_v7, 0.0  ;;  %v1314_v30 = vadd.f32 %v2579_v4, %v2574_v34 }
 0x1b8   : > { %v1374_v23 = vmax.f32 %v1314_v30, 0.0 }
 0x1ba   : > { %v1419_v9 = vsel %vm1393_vm13, %v1374_v23, 0.0 }
 0x1bb   : > { %v856_v13 = vpop.permute.xlu0 %855 }
 0x1bc   : > { %v1136_v14 = vsel %vm1114_vm9, %v1103_v17, %v856_v13  ;;  %v866_v40 = vpop.permute.xlu2 %865  ;;  %v1396_v13 = vadd.f32 %v1395_v15, %v1394_v41 }
 0x1bd   : > { %v1169_v48 = vsel %vm1147_vm10, %v1136_v14, %v903_v1  ;;  %v938_v57 = vpop.permute.xlu1 %937  ;;  %v1318_v1 = vpop.f32.mrf.mxu2  ;;  %v1399_v14 = vsel %vm1393_vm13, %v1364_v32, 0.0 }
 0x1be   : > { %v1202_v8 = vsel %vm1180_vm11, %v1169_v48, %v938_v57  ;;  %v1366_v48 = vmax.f32 %v1294_v33, 0.0  ;;  %v1319_v7 = vadd.f32 %v2579_v4, %v1318_v1 }
 0x1bf   : > { %1656 = vmatmul.msk.bf16.gmra.mxu2 %vm1232_vm12, %v1202_v8  ;;  %v1398_v8 = vadd.f32 %v1397_v18, %v1396_v13 }
 0x1c0   : > { %v1376_v15 = vmax.f32 %v1319_v7, 0.0 }
 0x1c2   : > { %v1423_v41 = vsel %vm1393_vm13, %v1376_v15, 0.0 }
 0x1c3   : > { %v792_v60 = vpop.permute.xlu0 %791 }
 0x1c4   : > { %v1078_v27 = vsel %vm1048_vm7, %v1045_v22, %v792_v60  ;;  %v1400_v60 = vadd.f32 %v1399_v14, %v1398_v8 }
 0x1c5   : > { %v911_v36 = vpop.permute.xlu1 %910  ;;  %v1111_v29 = vsel %vm1081_vm8, %v1078_v27, %v827_v10 }
 0x1c6   : > { %v1402_v27 = vadd.f32 %v1401_v63, %v1400_v60 }
 0x1ca   : > { %v1301_v31 = vpop.f32.mrf.mxu1 }
 0x1cb   : > { %v864_v26 = vpop.permute.xlu0 %863 }
 0x1cc   : > { %v1144_v0 = vsel %vm1114_vm9, %v1111_v29, %v864_v26  ;;  %v1321_v29 = vpop.f32.mrf.mxu2  ;;  %v1302_v26 = vadd.f32 %v2579_v4, %v1301_v31 }
 0x1cd   : > { %v1177_v16 = vsel %vm1147_vm10, %v1144_v0, %v911_v36  ;;  %v710_v25 = vpop.permute.xlu1 %709  ;;  %v1403_v36 = vsel %vm1393_vm13, %v1366_v48, 0.0  ;;  %v1322_v34 = vadd.f32 %v2579_v4, %v1321_v29 }
 0x1ce   : > { %v1210_v45 = vsel %vm1180_vm11, %v1177_v16, %v946_v35  ;;  %v1404_v0 = vadd.f32 %v1403_v36, %v1402_v27 }
 0x1cf   : > { %1660 = vmatmul.msk.bf16.gmra.mxu3 %vm1232_vm12, %v1210_v45  ;;  %v2600_v45 = vpop.f32.mrf.mxu3  ;;  %v1377_v18 = vmax.f32 %v1322_v34, 0.0 }
 0x1d1   : > { %v1425_v1 = vsel %vm1393_vm13, %v1377_v18, 0.0 }
 0x1d2   : > { %v1303_v3 = vpop.f32.mrf.mxu1 }
 0x1d3   : > { %v629_v6 = vpop.permute.xlu0 %628  ;;  %v1304_v47 = vadd.f32 %v2579_v4, %v1303_v3 }
 0x1d4   : > { %v981_v42 = vsel %vm949_vm4, %v2400_v52, %v629_v6  ;;  %v1369_v6 = vmax.f32 %v1302_v26, 0.0 }
 0x1d5   : > { %v829_v38 = vpop.permute.xlu1 %828  ;;  %v1014_v55 = vsel %vm982_vm5, %v981_v42, %v710_v25 }
 0x1d6   : > { %v1047_v59 = vsel %vm1015_vm6, %v1014_v55, %v747_v5 }
 0x1db   : > { %v794_v51 = vpop.permute.xlu0 %793 }
 0x1dc   : > { %v1080_v53 = vsel %vm1048_vm7, %v1047_v59, %v794_v51  ;;  %v1409_v51 = vsel %vm1393_vm13, %v1369_v6, 0.0  ;;  %v1370_v59 = vmax.f32 %v1304_v47, 0.0 }
 0x1dd   : > { %v1113_v43 = vsel %vm1081_vm8, %v1080_v53, %v829_v38  ;;  %v948_v24 = vpop.permute.xlu1 %947 }
 0x1de   : > { %v1146_v46 = vsel %vm1114_vm9, %v1113_v43, %v866_v40  ;;  %v1323_v43 = vpop.f32.mrf.mxu2 }
 0x1e3   : > { %v913_v12 = vpop.permute.xlu0 %912 }
 0x1e4   : > { %v1179_v19 = vsel %vm1147_vm10, %v1146_v46, %v913_v12  ;;  %v1411_v46 = vsel %vm1393_vm13, %v1370_v59, 0.0 }
 0x1e5   : > { %v1212_v52 = vsel %vm1180_vm11, %v1179_v19, %v948_v24  ;;  %v1312_v24 = vadd.f32 %v2579_v4, %v1311_v62  ;;  %v1338_v19 = vpop.f32.mrf.mxu3  ;;  %v1317_v62 = vadd.f32 %v2579_v4, %v2582_v20  ;;  %v1324_v20 = vadd.f32 %v2579_v4, %v1323_v43 }
 0x1e6   : > { %1661 = vmatmul.msk.bf16.gmra.mxu3 %vm1232_vm12, %v1212_v52 }
 0x1e7   : > { %v1373_v28 = vmax.f32 %v1312_v24, 0.0  ;;  %v1375_v39 = vmax.f32 %v1317_v62, 0.0  ;;  %v1378_v13 = vmax.f32 %v1324_v20, 0.0 }
 0x1e9   : > { %v1417_v44 = vsel %vm1393_vm13, %v1373_v28, 0.0  ;;  %v1421_v3 = vsel %vm1393_vm13, %v1375_v39, 0.0  ;;  %v1427_v63 = vsel %vm1393_vm13, %v1378_v13, 0.0 }
 0x1ea   : > { %v1296_v49 = vpop.f32.mrf.mxu0 }
 0x1eb   : > { %v1297_v17 = vadd.f32 %v2579_v4, %v1296_v49 }
 0x1ed   : > { %v1367_v10 = vmax.f32 %v1297_v17, 0.0  ;;  %v1341_v56 = vpop.f32.mrf.mxu3  ;;  %v1467_v17 = vld [vmem:[%s2703_s3 + $0x18] sm:$0xff] }
 0x1ee   : > { %1484 = vmatpush.msrb.mxu1 %v1467_v17 }
 0x1ef   : > { %v1405_v35 = vsel %vm1393_vm13, %v1367_v10, 0.0 }
 0x1f0   : > { %v1406_v25 = vadd.f32 %v1405_v35, %v1404_v0 }
 0x1f2   : > { %v1298_v50 = vpop.f32.mrf.mxu0 }
 0x1f3   : > { %v1299_v57 = vadd.f32 %v2579_v4, %v1298_v50 }
 0x1f5   : > { %v1368_v22 = vmax.f32 %v1299_v57, 0.0  ;;  %v1343_v50 = vpop.f32.mrf.mxu3 }
 0x1f7   : > { %v1407_v16 = vsel %vm1393_vm13, %v1368_v22, 0.0 }
 0x1f8   : > { %v1408_v5 = vadd.f32 %v1407_v16, %v1406_v25  ;;  %v1337_v25 = vadd.f32 %v2579_v4, %v2600_v45 }
 0x1fa   : > { %v1410_v58 = vadd.f32 %v1409_v51, %v1408_v5  ;;  %v1383_v59 = vmax.f32 %v1337_v25, 0.0 }
 0x1fc   : > { %v1412_v52 = vadd.f32 %v1411_v46, %v1410_v58  ;;  %v1437_v45 = vsel %vm1393_vm13, %v1383_v59, 0.0 }
 0x212   : > { %v1326_v49 = vpop.f32.mrf.mxu2 }
 0x213   : > { %v1327_v14 = vadd.f32 %v2579_v4, %v1326_v49  ;;  %v1465_v49 = vld [vmem:[%s2703_s3 + $0x8] sm:$0xff] }
 0x215   : > { %v1379_v10 = vmax.f32 %v1327_v14, 0.0 }
 0x217   : > { %v1429_v22 = vsel %vm1393_vm13, %v1379_v10, 0.0 }
 0x21a   : > { %v1328_v32 = vpop.f32.mrf.mxu2 }
 0x21b   : > { %v1306_v11 = vpop.f32.mrf.mxu1  ;;  %v1329_v60 = vadd.f32 %v2579_v4, %v1328_v32 }
 0x21c   : > { %v1307_v42 = vadd.f32 %v2579_v4, %v1306_v11 }
 0x21d   : > { %v1380_v27 = vmax.f32 %v1329_v60, 0.0 }
 0x21e   : > { %v1371_v53 = vmax.f32 %v1307_v42, 0.0 }
 0x21f   : > { %v1431_v6 = vsel %vm1393_vm13, %v1380_v27, 0.0 }
 0x220   : > { %v1413_v12 = vsel %vm1393_vm13, %v1371_v53, 0.0  ;;  %v1339_v53 = vadd.f32 %v2579_v4, %v1338_v19 }
 0x221   : > { %v1414_v61 = vadd.f32 %v1413_v12, %v1412_v52 }
 0x222   : > { %v1384_v43 = vmax.f32 %v1339_v53, 0.0 }
 0x223   : > { %v1308_v38 = vpop.f32.mrf.mxu1 }
 0x224   : > { %v1309_v55 = vadd.f32 %v2579_v4, %v1308_v38  ;;  %v1466_v38 = vld [vmem:[%s2703_s3 + $0x10] sm:$0xff]  ;;  %v1439_v12 = vsel %vm1393_vm13, %v1384_v43, 0.0 }
 0x225   : > { %1485 = vmatpush.msrb.mxu1 %v1466_v38 }
 0x226   : > { %v1372_v40 = vmax.f32 %v1309_v55, 0.0 }
 0x227   : > { %1486 = vmatpush.msrb.mxu1 %v1465_v49 }
 0x228   : > { %v1415_v2 = vsel %vm1393_vm13, %v1372_v40, 0.0  ;;  %v1342_v40 = vadd.f32 %v2579_v4, %v1341_v56 }
 0x229   : > { %v1416_v31 = vadd.f32 %v1415_v2, %v1414_v61  ;;  %v1346_v8 = vpop.f32.mrf.mxu3  ;;  %v1344_v2 = vadd.f32 %v2579_v4, %v1343_v50 }
 0x22a   : > { %v1385_v52 = vmax.f32 %v1342_v40, 0.0 }
 0x22b   : > { %v1418_v54 = vadd.f32 %v1417_v44, %v1416_v31  ;;  %v1386_v30 = vmax.f32 %v1344_v2, 0.0  ;;  %v1347_v31 = vadd.f32 %v2579_v4, %v1346_v8  ;;  %v1464_v44 = vld [vmem:[%s2703_s3] sm:$0xff] }
 0x22c   : > { %v1441_v28 = vsel %vm1393_vm13, %v1385_v52, 0.0  ;;  %1487 = vmatpush.msrb.mxu1 %v1464_v44 }
 0x22d   : > { %v1420_v21 = vadd.f32 %v1419_v9, %v1418_v54  ;;  %v1443_v62 = vsel %vm1393_vm13, %v1386_v30, 0.0  ;;  %v1387_v56 = vmax.f32 %v1347_v31, 0.0 }
 0x22f   : > { %v1422_v33 = vadd.f32 %v1421_v3, %v1420_v21  ;;  %v1445_v39 = vsel %vm1393_vm13, %v1387_v56, 0.0 }
 0x231   : > { %v1424_v37 = vadd.f32 %v1423_v41, %v1422_v33  ;;  %v1348_v42 = vpop.f32.mrf.mxu3 }
 0x232   : > { %v1349_v54 = vadd.f32 %v2579_v4, %v1348_v42 }
 0x233   : > { %v1426_v57 = vadd.f32 %v1425_v1, %v1424_v37 }
 0x234   : > { %v1388_v7 = vmax.f32 %v1349_v54, 0.0 }
 0x235   : > { %v1428_v36 = vadd.f32 %v1427_v63, %v1426_v57 }
 0x236   : > { %v1447_v32 = vsel %vm1393_vm13, %v1388_v7, 0.0 }
 0x237   : > { %v1430_v35 = vadd.f32 %v1429_v22, %v1428_v36 }
 0x239   : > { %v1432_v5 = vadd.f32 %v1431_v6, %v1430_v35 }
 0x242   : > { %v1331_v48 = vpop.f32.mrf.mxu2 }
 0x243   : > { %v1332_v11 = vadd.f32 %v2579_v4, %v1331_v48 }
 0x245   : > { %v1381_v29 = vmax.f32 %v1332_v11, 0.0 }
 0x247   : > { %v1433_v47 = vsel %vm1393_vm13, %v1381_v29, 0.0 }
 0x248   : > { %v1434_v51 = vadd.f32 %v1433_v47, %v1432_v5 }
 0x24a   : > { %v1333_v26 = vpop.f32.mrf.mxu2 }
 0x24b   : > { %v1334_v0 = vadd.f32 %v2579_v4, %v1333_v26 }
 0x24d   : > { %v1382_v16 = vmax.f32 %v1334_v0, 0.0 }
 0x24f   : > { %v1435_v55 = vsel %vm1393_vm13, %v1382_v16, 0.0 }
 0x250   : > { %v1436_v58 = vadd.f32 %v1435_v55, %v1434_v51 }
 0x252   : > { %v1438_v24 = vadd.f32 %v1437_v45, %v1436_v58  ;;  %v1351_v46 = vpop.f32.mrf.mxu3 }
 0x253   : > { %v1352_v21 = vadd.f32 %v2579_v4, %v1351_v46 }
 0x254   : > { %v1440_v61 = vadd.f32 %v1439_v12, %v1438_v24 }
 0x255   : > { %v1389_v33 = vmax.f32 %v1352_v21, 0.0 }
 0x256   : > { %v1442_v19 = vadd.f32 %v1441_v28, %v1440_v61 }
 0x257   : > { %v1449_v20 = vsel %vm1393_vm13, %v1389_v33, 0.0 }
 0x258   : > { %v1444_v9 = vadd.f32 %v1443_v62, %v1442_v19 }
 0x25a   : > { %v1353_v23 = vpop.f32.mrf.mxu3  ;;  %v1446_v3 = vadd.f32 %v1445_v39, %v1444_v9 }
 0x25b   : > { %v1354_v15 = vadd.f32 %v2579_v4, %v1353_v23 }
 0x25c   : > { %v1448_v41 = vadd.f32 %v1447_v32, %v1446_v3 }
 0x25d   : > { %v1390_v18 = vmax.f32 %v1354_v15, 0.0 }
 0x25e   : > { %v1450_v17 = vadd.f32 %v1449_v20, %v1448_v41 }
 0x25f   : > { %v1451_v1 = vsel %vm1393_vm13, %v1390_v18, 0.0 }
 0x260   : > { %v1452_v57 = vadd.f32 %v1451_v1, %v1450_v17 }
 0x269   : > { %v1356_v34 = vpop.f32.mrf.mxu3 }
 0x26a   : > { %v1357_v50 = vadd.f32 %v2579_v4, %v1356_v34 }
 0x26c   : > { %v1391_v37 = vmax.f32 %v1357_v50, 0.0 }
 0x26e   : > { %v1453_v14 = vsel %vm1393_vm13, %v1391_v37, 0.0 }
 0x26f   : > { %v1454_v63 = vadd.f32 %v1453_v14, %v1452_v57 }
 0x271   : > { %v1358_v13 = vpop.f32.mrf.mxu3 }
 0x272   : > { %v1359_v48 = vadd.f32 %v2579_v4, %v1358_v13  ;;  %v1468_v4 = vld [vmem:[%s2704_s4] sm:$0x1] }
 0x274   : > { %v1392_v8 = vmax.f32 %v1359_v48, 0.0 }
 0x276   : > { %v1455_v10 = vsel %vm1393_vm13, %v1392_v8, 0.0 }
 0x277   : > { %v1456_v60 = vadd.f32 %v1455_v10, %v1454_v63 }
 0x279   : > { %v1457_v11 = vrot.slane %v1456_v60, 4 }
 0x27b   : > { %v1458_v36 = vadd.f32 %v1457_v11, %v1456_v60 }
 0x27d   : > { %v1459_v22 = vrot.slane %v1458_v36, 2 }
 0x27f   : > { %v1460_v27 = vadd.f32 %v1459_v22, %v1458_v36 }
 0x281   : > { %v1461_v29 = vrot.slane %v1460_v27, 1 }
 0x283   : > { %v1462_v26 = vadd.f32 %v1461_v29, %v1460_v27 }
 0x285   : > { %v1463_v35 = vmul.f32 0.00390625, %v1462_v26 }
 0x287   : > { %1662 = vmatmul.msk.f32.vlgmr.msrb.gmra.mxu1 %vm1393_vm13, %v1463_v35 }
 0x304   : > { %v1489_v0 = vpop.f32.mrf.mxu1 }
 0x305   : > { %v1490_v16 = vadd.f32 %v1489_v0, %v1468_v4 }
 0x307   : > { %1492 = vst [vmem:[%s216_s8] sm:$0x1] %v1490_v16 }
 0x308   : > { %1768 = shalt.err (!%p1765_p3)
}
 0x309   : > { %1692 = dma.vmem_to_hbm [thread:$0]  (%p1882_p5), %s1505_s9, 16, %s1507_s10, %s1494_s11  }
 0x30a PF: > { %p1698_p4 = scmp.ge.s32.totalorder %s1803_s21, 2  ;;  %s1518_s23 = sand.u32 1, %s1791_s18  }
 0x30b   : > { %s1519_s25 = scalar_lea.sflag [#allocation3], %s1518_s23 }
 0x30c   : > { %p1695_p7 = pnand %p1698_p4, %p1886_p6 }
 0x30e   : > { %p1696_p8 = pneg %p1695_p7 }
 0x310   : > { %1786 = dma.done.wait (%p1696_p8), %s1519_s25, 16  }
 0x311   : > { %1788 = vsyncadd (%p1696_p8), %s1519_s25, 4294967280  ;;  %p15_p9 = scmp.ge.s32.totalorder %s1869_s24, 4   ;;  %s2708_s18 = smov %s1795_s19 }
 0x312   : > { %s2709_s19 = smov %s1799_s20  ;;  %s2710_s20 = smov %s1880_s27 }
 0x313   : > { %s2711_s21 = smov %s1869_s24  ;;  %17 = sbr.rel (!%p15_p9) target bundleno = 3 (0x3), region = 75 }
 0x318   :  { %1524 = vsyncpa [#allocation3], 1 }
 0x319   :  { %1526 = vsyncpa [#allocation3 + $0x1], 1 }

</bundles_post_ra>
